<compile_context>
chip_gen: v7x
topology: tpu7x:2x2x1
jax: 0.10.0
libtpu: 0.0.40
codegen_flags: <defaults>
</compile_context>

<pallas_src>
import functools

import jax
import jax.numpy as jnp
from jax.experimental import pallas as pl
from jax.experimental.pallas import tpu as pltpu


def _round_up(x, m):
    return (x + m - 1) // m * m


def _pad2(x, rows, cols):
    return jnp.pad(x, ((0, rows - x.shape[0]), (0, cols - x.shape[1])))


# -----------------------------------------------------------------------------
# Kernel A: Bahdanau attention (online softmax over src-length chunks) + GRU.
# Grid: (n_src_chunks,) -- "arbitrary" (softmax / context state carried in scratch).
# -----------------------------------------------------------------------------
def attn_gru_kernel(emb_ref, hid_ref, enc_ref, mask_ref,
                    awh_ref, awe_ref, ab_ref, vw_ref,
                    wih_e_ref, wih_w_ref, whh_ref,
                    br_ref, bz_ref, bin_ref, bhn_ref,
                    hnew_ref, act_ref,
                    hproj_sc, m_sc, l_sc, ctx_sc):
    s = pl.program_id(0)
    last = pl.num_programs(0) - 1
    SC, B, E2 = enc_ref.shape
    _, D = hid_ref.shape

    dot = functools.partial(jnp.dot, preferred_element_type=jnp.float32)

    hid = hid_ref[...]                                   # (B, D)  f32
    hid_bf = hid.astype(jnp.bfloat16)

    @pl.when(s == 0)
    def _init():
        # hidden projection of the attention MLP: computed once, cached in scratch
        hproj_sc[...] = dot(hid_bf, awh_ref[...]) + ab_ref[...]
        m_sc[...] = jnp.full(m_sc.shape, -1e30, jnp.float32)
        l_sc[...] = jnp.zeros(l_sc.shape, jnp.float32)
        ctx_sc[...] = jnp.zeros(ctx_sc.shape, jnp.float32)

    # ---- attention scores for this src-length chunk --------------------------
    enc3 = enc_ref[...]                                              # (SC, B, E2) bf16
    enc_proj = dot(enc3.reshape(SC * B, E2), awe_ref[...])           # (SC*B, D)   f32
    energy = jnp.tanh(enc_proj.reshape(SC, B, D) + hproj_sc[...][None, :, :])
    # score reduction on the MXU: v replicated across the 128-lane N tile (no XLU)
    scores = dot(energy.reshape(SC * B, D).astype(jnp.bfloat16), vw_ref[...])
    scores = scores.reshape(SC, B, 128)[:, :, 0:1] + mask_ref[...]   # (SC, B, 1)  f32

    # ---- online (flash-style) softmax + weighted-context accumulation --------
    m_prev = m_sc[...]                                               # (B, 1)
    m_new = jnp.maximum(m_prev, jnp.max(scores, axis=0))             # leading-axis max
    alpha = jnp.exp(m_prev - m_new)
    p = jnp.exp(scores - m_new[None, :, :])                          # (SC, B, 1)
    l_sc[...] = alpha * l_sc[...] + jnp.sum(p, axis=0)
    ctx_sc[...] = alpha * ctx_sc[...] + jnp.sum(p * enc3, axis=0)    # (B, E2) f32
    m_sc[...] = m_new

    # ---- final chunk: normalize context, run the GRU cell, emit outputs ------
    @pl.when(s == last)
    def _finalize():
        weighted = ctx_sc[...] / l_sc[...]                           # (B, E2) f32
        w_bf = weighted.astype(jnp.bfloat16)
        emb = emb_ref[...]                                           # (B, EMB) bf16

        # fused gate matmuls; lanes are [r | z | n] at 128-multiple boundaries
        gi = dot(emb, wih_e_ref[...]) + dot(w_bf, wih_w_ref[...])    # (B, 3D) f32
        gh = dot(hid_bf, whh_ref[...])                               # (B, 3D) f32
        r = jax.nn.sigmoid(gi[:, 0:D] + gh[:, 0:D] + br_ref[...])
        z = jax.nn.sigmoid(gi[:, D:2 * D] + gh[:, D:2 * D] + bz_ref[...])
        n = jnp.tanh(gi[:, 2 * D:3 * D] + bin_ref[...]
                     + r * (gh[:, 2 * D:3 * D] + bhn_ref[...]))
        h_new = (1.0 - z) * n + z * hid                              # (B, D) f32

        hnew_ref[...] = h_new
        # concatenated activation [h_new | weighted | embedded] for the out-proj
        act_ref[:, 0:D] = h_new.astype(jnp.bfloat16)
        act_ref[:, D:D + E2] = w_bf
        act_ref[:, D + E2:] = emb


# -----------------------------------------------------------------------------
# Kernel B: fused output projection, tiled & pipelined over the vocabulary dim.
# -----------------------------------------------------------------------------
def out_proj_kernel(act_ref, w_ref, b_ref, pred_ref):
    pred_ref[...] = (jnp.dot(act_ref[...], w_ref[...],
                             preferred_element_type=jnp.float32) + b_ref[...])


# -----------------------------------------------------------------------------
# Parameters (synthetic, in "math" (in, out) layout, per-gate / per-block split).
# -----------------------------------------------------------------------------
def init_params(key, output_dim, emb_dim, enc_hid_dim, dec_hid_dim, bidirectional=True):
    koeff = 1 + int(bidirectional)
    E2 = enc_hid_dim * koeff
    D = dec_hid_dim
    ks = jax.random.split(key, 24)

    def u(k, shape, scale=0.1):
        return jax.random.uniform(k, shape, jnp.float32, -scale, scale)

    return dict(
        embedding=u(ks[0], (output_dim, emb_dim)),
        # attention: Linear(E2 + D -> D) split (hidden | enc); v: Linear(D -> 1)
        attn_wh=u(ks[1], (D, D)),
        attn_we=u(ks[2], (E2, D)),
        attn_b=u(ks[3], (1, D)),
        v=u(ks[4], (1, D)),
        # GRU(E2 + emb -> D), input split (embedded | weighted), gate order (r, z, n)
        wih_e_r=u(ks[5], (emb_dim, D)), wih_e_z=u(ks[6], (emb_dim, D)), wih_e_n=u(ks[7], (emb_dim, D)),
        wih_w_r=u(ks[8], (E2, D)), wih_w_z=u(ks[9], (E2, D)), wih_w_n=u(ks[10], (E2, D)),
        b_ih_r=u(ks[11], (1, D)), b_ih_z=u(ks[12], (1, D)), b_ih_n=u(ks[13], (1, D)),
        whh_r=u(ks[14], (D, D)), whh_z=u(ks[15], (D, D)), whh_n=u(ks[16], (D, D)),
        b_hh_r=u(ks[17], (1, D)), b_hh_z=u(ks[18], (1, D)), b_hh_n=u(ks[19], (1, D)),
        # out: Linear(E2 + D + emb -> O) split (output | weighted | embedded)
        out_wo=u(ks[20], (D, output_dim)),
        out_ww=u(ks[21], (E2, output_dim)),
        out_we=u(ks[22], (emb_dim, output_dim)),
        out_b=u(ks[23], (1, output_dim)),
    )


def prepare_params(params, out_tile=1024):
    """Once-per-model weight prep: pad feature dims to lane multiples (128),
    fuse GRU gate weights along lanes, stack the out-projection into one slab,
    and cast all MXU weight slabs to bf16. Done outside the decode hot path."""
    D = params["attn_wh"].shape[0]
    E2 = params["attn_we"].shape[0]
    EMB = params["embedding"].shape[1]
    O = params["out_b"].shape[1]

    Dp, E2p, EMBp = (_round_up(x, 128) for x in (D, E2, EMB))
    Kp = Dp + E2p + EMBp

    # vocab tiling: grid length forced even and >= 2 (keeps both v7x TCs busy)
    Op128 = _round_up(O, 128)
    n_tiles = max(2, pl.cdiv(Op128, max(128, _round_up(out_tile, 128))))
    n_tiles += n_tiles % 2
    TO = _round_up(pl.cdiv(Op128, n_tiles), 128)
    Op = n_tiles * TO

    bf = jnp.bfloat16
    w = lambda x, r, c: _pad2(x, r, c).astype(bf)   # weight: pad + bf16 (MXU fast path)
    b = lambda x, c: _pad2(x, 1, c)                 # bias:   pad, keep f32

    def pack_gates(prefix, rows):
        # [r | z | n] along the lane axis, each gate padded to Dp (128-multiple)
        return jnp.concatenate(
            [_pad2(params[prefix + g], rows, Dp) for g in ("r", "z", "n")],
            axis=1).astype(bf)                                           # (rows, 3*Dp)

    v_col = _pad2(params["v"].T, Dp, 1)                                  # (Dp, 1)
    out_w = jnp.concatenate(
        [_pad2(params["out_wo"], Dp, Op),
         _pad2(params["out_ww"], E2p, Op),
         _pad2(params["out_we"], EMBp, Op)], axis=0).astype(bf)          # (Kp, Op)

    prep = dict(
        embedding=_pad2(params["embedding"], O, EMBp).astype(bf),        # (O, EMBp)
        attn_wh=w(params["attn_wh"], Dp, Dp),
        attn_we=w(params["attn_we"], E2p, Dp),
        attn_b=b(params["attn_b"], Dp),
        v_wide=jnp.tile(v_col, (1, 128)).astype(bf),                     # (Dp, 128)
        wih_e=pack_gates("wih_e_", EMBp),
        wih_w=pack_gates("wih_w_", E2p),
        whh=pack_gates("whh_", Dp),
        b_r=b(params["b_ih_r"] + params["b_hh_r"], Dp),
        b_z=b(params["b_ih_z"] + params["b_hh_z"], Dp),
        b_in=b(params["b_ih_n"], Dp),
        b_hn=b(params["b_hh_n"], Dp),
        out_w=out_w,
        out_b=b(params["out_b"], Op),
    )
    prep["dims"] = dict(D=D, E2=E2, EMB=EMB, O=O,
                        Dp=Dp, E2p=E2p, EMBp=EMBp, Kp=Kp, Op=Op, TO=TO)
    return prep


def prepare_encoder(encoder_outputs, prep, s_chunk=8):
    """Once-per-source-sequence prep: pad (S -> chunk multiple, B -> 8-multiple,
    E2 -> 128-multiple), cast to bf16, and build the additive src-length mask.
    encoder_outputs is constant across decode steps, so this is NOT per-step work."""
    d = prep["dims"]
    S, B, E2 = encoder_outputs.shape
    Bp = _round_up(B, 8)
    SC = max(1, s_chunk)
    S_pad = _round_up(S, SC)
    enc_bf = jnp.pad(encoder_outputs,
                     ((0, S_pad - S), (0, Bp - B), (0, d["E2p"] - E2))
                     ).astype(jnp.bfloat16)                               # (S_pad, Bp, E2p)
    mask = jnp.where(jnp.arange(S_pad) < S, 0.0, -1e30).astype(jnp.float32)
    mask = jnp.broadcast_to(mask[:, None, None], (S_pad, Bp, 1))          # (S_pad, Bp, 1)
    return dict(enc=enc_bf, mask=mask,
                dims=dict(S=S, B=B, Bp=Bp, SC=SC, S_pad=S_pad,
                          n_chunks=S_pad // SC))


# -----------------------------------------------------------------------------
# Forward wrapper (one decode step).
# -----------------------------------------------------------------------------
def decoder_with_attention_forward(input_ids, hidden, enc_prep, prep):
    """input_ids: (B,) int32; hidden: (B, D) f32; enc_prep: from prepare_encoder."""
    d = prep["dims"]
    e = enc_prep["dims"]
    B, Bp, SC, n_chunks = e["B"], e["Bp"], e["SC"], e["n_chunks"]
    Dp, E2p, EMBp, Kp, Op, TO = d["Dp"], d["E2p"], d["EMBp"], d["Kp"], d["Op"], d["TO"]

    # glue: embedding row gather (dropout == identity at inference) + batch pad.
    emb_bf = jnp.pad(jnp.take(prep["embedding"], input_ids, axis=0),
                     ((0, Bp - B), (0, 0)))                               # (Bp, EMBp) bf16
    hid_pad = jnp.pad(hidden, ((0, Bp - B), (0, Dp - d["D"])))            # (Bp, Dp)   f32

    const2 = lambda shape: pl.BlockSpec(shape, lambda s: (0, 0))

    # ---- Kernel A: chunked attention + GRU ------------------------------------
    grid_a = pltpu.PrefetchScalarGridSpec(
        num_scalar_prefetch=0,
        grid=(n_chunks,),
        in_specs=[
            const2((Bp, EMBp)),                                   # embedded tokens
            const2((Bp, Dp)),                                     # hidden (aliased out)
            pl.BlockSpec((SC, Bp, E2p), lambda s: (s, 0, 0)),     # encoder chunk
            pl.BlockSpec((SC, Bp, 1), lambda s: (s, 0, 0)),       # src-length mask
            const2((Dp, Dp)),                                     # attn_wh
            const2((E2p, Dp)),                                    # attn_we
            const2((1, Dp)),                                      # attn_b
            const2((Dp, 128)),                                    # v (lane-replicated)
            const2((EMBp, 3 * Dp)),                               # wih_e [r|z|n]
            const2((E2p, 3 * Dp)),                                # wih_w [r|z|n]
            const2((Dp, 3 * Dp)),                                 # whh   [r|z|n]
            const2((1, Dp)), const2((1, Dp)),                     # b_r, b_z
            const2((1, Dp)), const2((1, Dp)),                     # b_in, b_hn
        ],
        out_specs=(const2((Bp, Dp)), const2((Bp, Kp))),
        scratch_shapes=[
            pltpu.VMEM((Bp, Dp), jnp.float32),    # cached attention hidden projection
            pltpu.VMEM((Bp, 1), jnp.float32),     # running max
            pltpu.VMEM((Bp, 1), jnp.float32),     # running denominator
            pltpu.VMEM((Bp, E2p), jnp.float32),   # running weighted context
        ],
    )
    flops_a = (2 * e["S_pad"] * Bp * E2p * Dp + 2 * e["S_pad"] * Bp * Dp * 128
               + 2 * Bp * Dp * Dp + 2 * e["S_pad"] * Bp * E2p
               + 2 * Bp * (EMBp + E2p + Dp) * 3 * Dp)
    bytes_a = (2 * e["S_pad"] * Bp * E2p + 4 * e["S_pad"] * Bp
               + 2 * (Dp * Dp + E2p * Dp + Dp * 128 + (EMBp + E2p + Dp) * 3 * Dp)
               + 4 * Bp * 2 * Dp + 2 * Bp * (EMBp + Kp))
    h_new_pad, act_bf = pl.pallas_call(
        attn_gru_kernel,
        out_shape=(jax.ShapeDtypeStruct((Bp, Dp), jnp.float32),
                   jax.ShapeDtypeStruct((Bp, Kp), jnp.bfloat16)),
        grid_spec=grid_a,
        input_output_aliases={1: 0},          # hidden state updated in place
        compiler_params=pltpu.CompilerParams(
            dimension_semantics=("arbitrary",),
            vmem_limit_bytes=32 * 1024 * 1024),
        cost_estimate=pl.CostEstimate(
            flops=flops_a,
            transcendentals=e["S_pad"] * Bp * (Dp + 1) + 3 * Bp * Dp,
            bytes_accessed=bytes_a),
    )(emb_bf, hid_pad, enc_prep["enc"], enc_prep["mask"],
      prep["attn_wh"], prep["attn_we"], prep["attn_b"], prep["v_wide"],
      prep["wih_e"], prep["wih_w"], prep["whh"],
      prep["b_r"], prep["b_z"], prep["b_in"], prep["b_hn"])

    # ---- Kernel B: fused output projection, vocab-tiled (megacore "parallel") --
    grid_b = pltpu.PrefetchScalarGridSpec(
        num_scalar_prefetch=0,
        grid=(Op // TO,),
        in_specs=[
            pl.BlockSpec((Bp, Kp), lambda j: (0, 0)),
            pl.BlockSpec((Kp, TO), lambda j: (0, j)),
            pl.BlockSpec((1, TO), lambda j: (0, j)),
        ],
        out_specs=pl.BlockSpec((Bp, TO), lambda j: (0, j)),
    )
    pred_pad = pl.pallas_call(
        out_proj_kernel,
        out_shape=jax.ShapeDtypeStruct((Bp, Op), jnp.float32),
        grid_spec=grid_b,
        compiler_params=pltpu.CompilerParams(
            dimension_semantics=("parallel",),
            vmem_limit_bytes=32 * 1024 * 1024),
        cost_estimate=pl.CostEstimate(
            flops=2 * Bp * Kp * Op, transcendentals=0,
            bytes_accessed=2 * Kp * Op + 4 * Op + 2 * Bp * Kp + 4 * Bp * Op),
    )(act_bf, prep["out_w"], prep["out_b"])

    return pred_pad[:B, :d["O"]], h_new_pad[:B, :d["D"]]


# -----------------------------------------------------------------------------
# Pure-JAX f32 reference matching the PyTorch forward semantics.
# -----------------------------------------------------------------------------
def reference_forward(input_ids, hidden, encoder_outputs, p):
    embedded = p["embedding"][input_ids]                                  # (B, EMB)
    enc = encoder_outputs                                                 # (S, B, E2)
    hid_proj = hidden @ p["attn_wh"] + p["attn_b"]
    energy = jnp.tanh(jnp.einsum("sbe,ed->sbd", enc, p["attn_we"]) + hid_proj[None])
    scores = jnp.einsum("sbd,d->sb", energy, p["v"][0])
    a = jax.nn.softmax(scores, axis=0)                                    # over src_len
    weighted = jnp.einsum("sb,sbe->be", a, enc)
    r = jax.nn.sigmoid(embedded @ p["wih_e_r"] + weighted @ p["wih_w_r"] + p["b_ih_r"]
                       + hidden @ p["whh_r"] + p["b_hh_r"])
    z = jax.nn.sigmoid(embedded @ p["wih_e_z"] + weighted @ p["wih_w_z"] + p["b_ih_z"]
                       + hidden @ p["whh_z"] + p["b_hh_z"])
    n = jnp.tanh(embedded @ p["wih_e_n"] + weighted @ p["wih_w_n"] + p["b_ih_n"]
                 + r * (hidden @ p["whh_n"] + p["b_hh_n"]))
    h_new = (1.0 - z) * n + z * hidden
    pred = (h_new @ p["out_wo"] + weighted @ p["out_ww"]
            + embedded @ p["out_we"] + p["out_b"])
    return pred, h_new


if __name__ == "__main__":
    # Small, deliberately non-aligned shapes to exercise padding / chunking / tiling.
    OUTPUT_DIM, EMB_DIM, ENC_HID, DEC_HID = 300, 24, 20, 48
    BATCH, SRC_LEN = 4, 10
    E2 = ENC_HID * 2  # bidirectional encoder

    root = jax.random.PRNGKey(0)
    k_par, k_tok, k_hid, k_enc = jax.random.split(root, 4)

    params = init_params(k_par, OUTPUT_DIM, EMB_DIM, ENC_HID, DEC_HID, bidirectional=True)
    prep = prepare_params(params, out_tile=128)          # small tile => 4-step vocab grid

    input_ids = jax.random.randint(k_tok, (BATCH,), 0, OUTPUT_DIM, dtype=jnp.int32)
    hidden = jax.random.normal(k_hid, (BATCH, DEC_HID), dtype=jnp.float32)
    encoder_outputs = jax.random.normal(k_enc, (SRC_LEN, BATCH, E2), dtype=jnp.float32)

    # per-sequence prep (hoisted out of the per-step hot path); 2 src chunks here
    enc_prep = prepare_encoder(encoder_outputs, prep, s_chunk=8)

    pred, h_new = decoder_with_attention_forward(input_ids, hidden, enc_prep, prep)
    pred = jax.block_until_ready(pred)
    h_new = jax.block_until_ready(h_new)

    pred_ref, h_ref = reference_forward(input_ids, hidden, encoder_outputs, params)
    assert pred.shape == (BATCH, OUTPUT_DIM) and h_new.shape == (BATCH, DEC_HID)
    # bf16 matmul inputs (f32 accumulation) => looser tolerance than pure f32.
    assert jnp.allclose(pred, pred_ref, atol=2e-2, rtol=2e-2), \
        float(jnp.max(jnp.abs(pred - pred_ref)))
    assert jnp.allclose(h_new, h_ref, atol=2e-2, rtol=2e-2), \
        float(jnp.max(jnp.abs(h_new - h_ref)))
    print("KERNEL_OK")
</pallas_src>

<mosaic_0001>
module attributes {stable_mosaic.version = 11 : i64} {
  func.func @attn_gru_kernel(%arg0: i32, %arg1: memref<8x128xbf16, #tpu.memory_space<vmem>>, %arg2: memref<8x128xf32, #tpu.memory_space<vmem>>, %arg3: memref<8x8x128xbf16, #tpu.memory_space<vmem>>, %arg4: memref<8x8x1xf32, #tpu.memory_space<vmem>>, %arg5: memref<128x128xbf16, #tpu.memory_space<vmem>>, %arg6: memref<128x128xbf16, #tpu.memory_space<vmem>>, %arg7: memref<1x128xf32, #tpu.memory_space<vmem>>, %arg8: memref<128x128xbf16, #tpu.memory_space<vmem>>, %arg9: memref<128x384xbf16, #tpu.memory_space<vmem>>, %arg10: memref<128x384xbf16, #tpu.memory_space<vmem>>, %arg11: memref<128x384xbf16, #tpu.memory_space<vmem>>, %arg12: memref<1x128xf32, #tpu.memory_space<vmem>>, %arg13: memref<1x128xf32, #tpu.memory_space<vmem>>, %arg14: memref<1x128xf32, #tpu.memory_space<vmem>>, %arg15: memref<1x128xf32, #tpu.memory_space<vmem>>, %arg16: memref<8x128xf32, #tpu.memory_space<vmem>>, %arg17: memref<8x384xbf16, #tpu.memory_space<vmem>>, %arg18: memref<8x128xf32, #tpu.memory_space<vmem>>, %arg19: memref<8x1xf32, #tpu.memory_space<vmem>>, %arg20: memref<8x1xf32, #tpu.memory_space<vmem>>, %arg21: memref<8x128xf32, #tpu.memory_space<vmem>>) attributes {dimension_semantics = [#tpu.dimension_semantics<arbitrary>], iteration_bounds = array<i64: 2>, scalar_prefetch = 0 : i64, scratch_operands = 4 : i64, tpu.core_type = #tpu.core_type<tc>, window_params = [{pipeline_mode = #tpu.pipeline_mode<synchronous>, transform_indices = @transform_0, window_bounds = array<i64: 8, 128>}, {pipeline_mode = #tpu.pipeline_mode<synchronous>, transform_indices = @transform_1, window_bounds = array<i64: 8, 128>}, {transform_indices = @transform_2, window_bounds = array<i64: 8, 8, 128>}, {transform_indices = @transform_3, window_bounds = array<i64: 8, 8, 1>}, {pipeline_mode = #tpu.pipeline_mode<synchronous>, transform_indices = @transform_4, window_bounds = array<i64: 128, 128>}, {pipeline_mode = #tpu.pipeline_mode<synchronous>, transform_indices = @transform_5, window_bounds = array<i64: 128, 128>}, {pipeline_mode = #tpu.pipeline_mode<synchronous>, transform_indices = @transform_6, window_bounds = array<i64: 1, 128>}, {pipeline_mode = #tpu.pipeline_mode<synchronous>, transform_indices = @transform_7, window_bounds = array<i64: 128, 128>}, {pipeline_mode = #tpu.pipeline_mode<synchronous>, transform_indices = @transform_8, window_bounds = array<i64: 128, 384>}, {pipeline_mode = #tpu.pipeline_mode<synchronous>, transform_indices = @transform_9, window_bounds = array<i64: 128, 384>}, {pipeline_mode = #tpu.pipeline_mode<synchronous>, transform_indices = @transform_10, window_bounds = array<i64: 128, 384>}, {pipeline_mode = #tpu.pipeline_mode<synchronous>, transform_indices = @transform_11, window_bounds = array<i64: 1, 128>}, {pipeline_mode = #tpu.pipeline_mode<synchronous>, transform_indices = @transform_12, window_bounds = array<i64: 1, 128>}, {pipeline_mode = #tpu.pipeline_mode<synchronous>, transform_indices = @transform_13, window_bounds = array<i64: 1, 128>}, {pipeline_mode = #tpu.pipeline_mode<synchronous>, transform_indices = @transform_14, window_bounds = array<i64: 1, 128>}, {pipeline_mode = #tpu.pipeline_mode<synchronous>, transform_indices = @transform_15, window_bounds = array<i64: 8, 128>}, {pipeline_mode = #tpu.pipeline_mode<synchronous>, transform_indices = @transform_16, window_bounds = array<i64: 8, 384>}]} {
    %c0 = arith.constant 0 : index
    %c0_0 = arith.constant 0 : index
    %0 = vector.load %arg2[%c0, %c0_0] : memref<8x128xf32, #tpu.memory_space<vmem>>, vector<8x128xf32>
    %1 = arith.truncf %0 : vector<8x128xf32> to vector<8x128xbf16>
    %c0_i32 = arith.constant 0 : i32
    %2 = arith.cmpi eq, %arg0, %c0_i32 : i32
    %3 = arith.extui %2 : i1 to i32
    %c0_i32_1 = arith.constant 0 : i32
    %4 = arith.cmpi ne, %3, %c0_i32_1 : i32
    scf.if %4 {
      %c0_31 = arith.constant 0 : index
      %c0_32 = arith.constant 0 : index
      %50 = vector.load %arg5[%c0_31, %c0_32] : memref<128x128xbf16, #tpu.memory_space<vmem>>, vector<128x128xbf16>
      %cst_33 = arith.constant dense<0.000000e+00> : vector<8x128xf32>
      %51 = tpu.matmul %1, %50, %cst_33 {dimension_numbers = #tpu.dot_dimension_numbers<[1], [0], [0], [1], [0, 0, 1, 1], [], []>} : vector<8x128xbf16>, vector<128x128xbf16>, vector<8x128xf32> -> vector<8x128xf32>
      %c0_34 = arith.constant 0 : index
      %c0_35 = arith.constant 0 : index
      %52 = vector.load %arg7[%c0_34, %c0_35] : memref<1x128xf32, #tpu.memory_space<vmem>>, vector<1x128xf32>
      %53 = vector.broadcast %52 : vector<1x128xf32> to vector<8x128xf32>
      %54 = arith.addf %51, %53 : vector<8x128xf32>
      %c0_36 = arith.constant 0 : index
      %c0_37 = arith.constant 0 : index
      %55 = vector.load %arg18[%c0_36, %c0_37] : memref<8x128xf32, #tpu.memory_space<vmem>>, vector<8x128xf32>
      tpu.vector_store %arg18[%c0_36, %c0_37], %54 {strides = array<i32>} : memref<8x128xf32, #tpu.memory_space<vmem>>, vector<8x128xf32>,
      %cst_38 = arith.constant -1.000000e+30 : f32
      %56 = vector.broadcast %cst_38 : f32 to vector<8x1xf32>
      %c0_39 = arith.constant 0 : index
      %c0_40 = arith.constant 0 : index
      %57 = vector.load %arg19[%c0_39, %c0_40] : memref<8x1xf32, #tpu.memory_space<vmem>>, vector<8x1xf32>
      tpu.vector_store %arg19[%c0_39, %c0_40], %56 {strides = array<i32>} : memref<8x1xf32, #tpu.memory_space<vmem>>, vector<8x1xf32>,
      %cst_41 = arith.constant 0.000000e+00 : f32
      %58 = vector.broadcast %cst_41 : f32 to vector<8x1xf32>
      %c0_42 = arith.constant 0 : index
      %c0_43 = arith.constant 0 : index
      %59 = vector.load %arg20[%c0_42, %c0_43] : memref<8x1xf32, #tpu.memory_space<vmem>>, vector<8x1xf32>
      tpu.vector_store %arg20[%c0_42, %c0_43], %58 {strides = array<i32>} : memref<8x1xf32, #tpu.memory_space<vmem>>, vector<8x1xf32>,
      %cst_44 = arith.constant 0.000000e+00 : f32
      %60 = vector.broadcast %cst_44 : f32 to vector<8x128xf32>
      %c0_45 = arith.constant 0 : index
      %c0_46 = arith.constant 0 : index
      %61 = vector.load %arg21[%c0_45, %c0_46] : memref<8x128xf32, #tpu.memory_space<vmem>>, vector<8x128xf32>
      tpu.vector_store %arg21[%c0_45, %c0_46], %60 {strides = array<i32>} : memref<8x128xf32, #tpu.memory_space<vmem>>, vector<8x128xf32>,
    } else {
    }
    %c0_2 = arith.constant 0 : index
    %c0_3 = arith.constant 0 : index
    %c0_4 = arith.constant 0 : index
    %5 = vector.load %arg3[%c0_2, %c0_3, %c0_4] : memref<8x8x128xbf16, #tpu.memory_space<vmem>>, vector<8x8x128xbf16>
    %6 = vector.shape_cast %5 : vector<8x8x128xbf16> to vector<64x128xbf16>
    %c0_5 = arith.constant 0 : index
    %c0_6 = arith.constant 0 : index
    %7 = vector.load %arg6[%c0_5, %c0_6] : memref<128x128xbf16, #tpu.memory_space<vmem>>, vector<128x128xbf16>
    %cst = arith.constant dense<0.000000e+00> : vector<64x128xf32>
    %8 = tpu.matmul %6, %7, %cst {dimension_numbers = #tpu.dot_dimension_numbers<[1], [0], [0], [1], [0, 0, 1, 1], [], []>} : vector<64x128xbf16>, vector<128x128xbf16>, vector<64x128xf32> -> vector<64x128xf32>
    %9 = vector.shape_cast %8 : vector<64x128xf32> to vector<8x8x128xf32>
    %c0_7 = arith.constant 0 : index
    %c0_8 = arith.constant 0 : index
    %10 = vector.load %arg18[%c0_7, %c0_8] : memref<8x128xf32, #tpu.memory_space<vmem>>, vector<8x128xf32>
    %11 = vector.shape_cast %10 : vector<8x128xf32> to vector<1x8x128xf32>
    %12 = vector.broadcast %11 : vector<1x8x128xf32> to vector<8x8x128xf32>
    %13 = arith.addf %9, %12 : vector<8x8x128xf32>
    %14 = math.tanh %13 : vector<8x8x128xf32>
    %15 = vector.shape_cast %14 : vector<8x8x128xf32> to vector<64x128xf32>
    %16 = arith.truncf %15 : vector<64x128xf32> to vector<64x128xbf16>
    %c0_9 = arith.constant 0 : index
    %c0_10 = arith.constant 0 : index
    %17 = vector.load %arg8[%c0_9, %c0_10] : memref<128x128xbf16, #tpu.memory_space<vmem>>, vector<128x128xbf16>
    %cst_11 = arith.constant dense<0.000000e+00> : vector<64x128xf32>
    %18 = tpu.matmul %16, %17, %cst_11 {dimension_numbers = #tpu.dot_dimension_numbers<[1], [0], [0], [1], [0, 0, 1, 1], [], []>} : vector<64x128xbf16>, vector<128x128xbf16>, vector<64x128xf32> -> vector<64x128xf32>
    %19 = vector.shape_cast %18 : vector<64x128xf32> to vector<8x8x128xf32>
    %20 = vector.extract_strided_slice %19 {offsets = [0, 0, 0], sizes = [8, 8, 1], strides = [1, 1, 1]} : vector<8x8x128xf32> to vector<8x8x1xf32>
    %c0_12 = arith.constant 0 : index
    %c0_13 = arith.constant 0 : index
    %c0_14 = arith.constant 0 : index
    %21 = vector.load %arg4[%c0_12, %c0_13, %c0_14] : memref<8x8x1xf32, #tpu.memory_space<vmem>>, vector<8x8x1xf32>
    %22 = arith.addf %20, %21 : vector<8x8x1xf32>
    %c0_15 = arith.constant 0 : index
    %c0_16 = arith.constant 0 : index
    %23 = vector.load %arg19[%c0_15, %c0_16] : memref<8x1xf32, #tpu.memory_space<vmem>>, vector<8x1xf32>
    %cst_17 = arith.constant dense<0xFF800000> : vector<8x1xf32>
    %24 = vector.multi_reduction <maximumf>, %22, %cst_17 [0] : vector<8x8x1xf32> to vector<8x1xf32>
    %25 = arith.maximumf %23, %24 : vector<8x1xf32>
    %26 = arith.subf %23, %25 : vector<8x1xf32>
    %27 = math.exp %26 : vector<8x1xf32>
    %28 = vector.shape_cast %25 : vector<8x1xf32> to vector<1x8x1xf32>
    %29 = vector.broadcast %28 : vector<1x8x1xf32> to vector<8x8x1xf32>
    %30 = arith.subf %22, %29 : vector<8x8x1xf32>
    %31 = math.exp %30 : vector<8x8x1xf32>
    %c0_18 = arith.constant 0 : index
    %c0_19 = arith.constant 0 : index
    %32 = vector.load %arg20[%c0_18, %c0_19] : memref<8x1xf32, #tpu.memory_space<vmem>>, vector<8x1xf32>
    %33 = arith.mulf %27, %32 : vector<8x1xf32>
    %cst_20 = arith.constant dense<0.000000e+00> : vector<8x1xf32>
    %34 = vector.multi_reduction <add>, %31, %cst_20 [0] : vector<8x8x1xf32> to vector<8x1xf32>
    %35 = arith.addf %33, %34 : vector<8x1xf32>
    %c0_21 = arith.constant 0 : index
    %c0_22 = arith.constant 0 : index
    %36 = vector.load %arg20[%c0_21, %c0_22] : memref<8x1xf32, #tpu.memory_space<vmem>>, vector<8x1xf32>
    tpu.vector_store %arg20[%c0_21, %c0_22], %35 {strides = array<i32>} : memref<8x1xf32, #tpu.memory_space<vmem>>, vector<8x1xf32>,
    %c0_23 = arith.constant 0 : index
    %c0_24 = arith.constant 0 : index
    %37 = vector.load %arg21[%c0_23, %c0_24] : memref<8x128xf32, #tpu.memory_space<vmem>>, vector<8x128xf32>
    %38 = vector.broadcast %27 : vector<8x1xf32> to vector<8x128xf32>
    %39 = arith.mulf %38, %37 : vector<8x128xf32>
    %40 = arith.extf %5 : vector<8x8x128xbf16> to vector<8x8x128xf32>
    %41 = vector.broadcast %31 : vector<8x8x1xf32> to vector<8x8x128xf32>
    %42 = arith.mulf %41, %40 : vector<8x8x128xf32>
    %cst_25 = arith.constant dense<0.000000e+00> : vector<8x128xf32>
    %43 = vector.multi_reduction <add>, %42, %cst_25 [0] : vector<8x8x128xf32> to vector<8x128xf32>
    %44 = arith.addf %39, %43 : vector<8x128xf32>
    %c0_26 = arith.constant 0 : index
    %c0_27 = arith.constant 0 : index
    %45 = vector.load %arg21[%c0_26, %c0_27] : memref<8x128xf32, #tpu.memory_space<vmem>>, vector<8x128xf32>
    tpu.vector_store %arg21[%c0_26, %c0_27], %44 {strides = array<i32>} : memref<8x128xf32, #tpu.memory_space<vmem>>, vector<8x128xf32>,
    %c0_28 = arith.constant 0 : index
    %c0_29 = arith.constant 0 : index
    %46 = vector.load %arg19[%c0_28, %c0_29] : memref<8x1xf32, #tpu.memory_space<vmem>>, vector<8x1xf32>
    tpu.vector_store %arg19[%c0_28, %c0_29], %25 {strides = array<i32>} : memref<8x1xf32, #tpu.memory_space<vmem>>, vector<8x1xf32>,
    %c1_i32 = arith.constant 1 : i32
    %47 = arith.cmpi eq, %arg0, %c1_i32 : i32
    %48 = arith.extui %47 : i1 to i32
    %c0_i32_30 = arith.constant 0 : i32
    %49 = arith.cmpi ne, %48, %c0_i32_30 : i32
    scf.if %49 {
      %c0_31 = arith.constant 0 : index
      %c0_32 = arith.constant 0 : index
      %50 = vector.load %arg21[%c0_31, %c0_32] : memref<8x128xf32, #tpu.memory_space<vmem>>, vector<8x128xf32>
      %c0_33 = arith.constant 0 : index
      %c0_34 = arith.constant 0 : index
      %51 = vector.load %arg20[%c0_33, %c0_34] : memref<8x1xf32, #tpu.memory_space<vmem>>, vector<8x1xf32>
      %52 = vector.broadcast %51 : vector<8x1xf32> to vector<8x128xf32>
      %53 = arith.divf %50, %52 : vector<8x128xf32>
      %54 = arith.truncf %53 : vector<8x128xf32> to vector<8x128xbf16>
      %c0_35 = arith.constant 0 : index
      %c0_36 = arith.constant 0 : index
      %55 = vector.load %arg1[%c0_35, %c0_36] : memref<8x128xbf16, #tpu.memory_space<vmem>>, vector<8x128xbf16>
      %c0_37 = arith.constant 0 : index
      %c0_38 = arith.constant 0 : index
      %56 = vector.load %arg9[%c0_37, %c0_38] : memref<128x384xbf16, #tpu.memory_space<vmem>>, vector<128x384xbf16>
      %cst_39 = arith.constant dense<0.000000e+00> : vector<8x384xf32>
      %57 = tpu.matmul %55, %56, %cst_39 {dimension_numbers = #tpu.dot_dimension_numbers<[1], [0], [0], [1], [0, 0, 1, 1], [], []>} : vector<8x128xbf16>, vector<128x384xbf16>, vector<8x384xf32> -> vector<8x384xf32>
      %c0_40 = arith.constant 0 : index
      %c0_41 = arith.constant 0 : index
      %58 = vector.load %arg10[%c0_40, %c0_41] : memref<128x384xbf16, #tpu.memory_space<vmem>>, vector<128x384xbf16>
      %cst_42 = arith.constant dense<0.000000e+00> : vector<8x384xf32>
      %59 = tpu.matmul %54, %58, %cst_42 {dimension_numbers = #tpu.dot_dimension_numbers<[1], [0], [0], [1], [0, 0, 1, 1], [], []>} : vector<8x128xbf16>, vector<128x384xbf16>, vector<8x384xf32> -> vector<8x384xf32>
      %60 = arith.addf %57, %59 : vector<8x384xf32>
      %c0_43 = arith.constant 0 : index
      %c0_44 = arith.constant 0 : index
      %61 = vector.load %arg11[%c0_43, %c0_44] : memref<128x384xbf16, #tpu.memory_space<vmem>>, vector<128x384xbf16>
      %cst_45 = arith.constant dense<0.000000e+00> : vector<8x384xf32>
      %62 = tpu.matmul %1, %61, %cst_45 {dimension_numbers = #tpu.dot_dimension_numbers<[1], [0], [0], [1], [0, 0, 1, 1], [], []>} : vector<8x128xbf16>, vector<128x384xbf16>, vector<8x384xf32> -> vector<8x384xf32>
      %63 = vector.extract_strided_slice %60 {offsets = [0, 0], sizes = [8, 128], strides = [1, 1]} : vector<8x384xf32> to vector<8x128xf32>
      %64 = vector.extract_strided_slice %62 {offsets = [0, 0], sizes = [8, 128], strides = [1, 1]} : vector<8x384xf32> to vector<8x128xf32>
      %65 = arith.addf %63, %64 : vector<8x128xf32>
      %c0_46 = arith.constant 0 : index
      %c0_47 = arith.constant 0 : index
      %66 = vector.load %arg12[%c0_46, %c0_47] : memref<1x128xf32, #tpu.memory_space<vmem>>, vector<1x128xf32>
      %67 = vector.broadcast %66 : vector<1x128xf32> to vector<8x128xf32>
      %68 = arith.addf %65, %67 : vector<8x128xf32>
      %69 = arith.negf %68 : vector<8x128xf32>
      %70 = math.exp %69 : vector<8x128xf32>
      %cst_48 = arith.constant 1.000000e+00 : f32
      %71 = vector.broadcast %cst_48 : f32 to vector<8x128xf32>
      %72 = arith.addf %71, %70 : vector<8x128xf32>
      %73 = arith.divf %71, %72 : vector<8x128xf32>
      %74 = vector.extract_strided_slice %60 {offsets = [0, 128], sizes = [8, 128], strides = [1, 1]} : vector<8x384xf32> to vector<8x128xf32>
      %75 = vector.extract_strided_slice %62 {offsets = [0, 128], sizes = [8, 128], strides = [1, 1]} : vector<8x384xf32> to vector<8x128xf32>
      %76 = arith.addf %74, %75 : vector<8x128xf32>
      %c0_49 = arith.constant 0 : index
      %c0_50 = arith.constant 0 : index
      %77 = vector.load %arg13[%c0_49, %c0_50] : memref<1x128xf32, #tpu.memory_space<vmem>>, vector<1x128xf32>
      %78 = vector.broadcast %77 : vector<1x128xf32> to vector<8x128xf32>
      %79 = arith.addf %76, %78 : vector<8x128xf32>
      %80 = arith.negf %79 : vector<8x128xf32>
      %81 = math.exp %80 : vector<8x128xf32>
      %cst_51 = arith.constant 1.000000e+00 : f32
      %82 = vector.broadcast %cst_51 : f32 to vector<8x128xf32>
      %83 = arith.addf %82, %81 : vector<8x128xf32>
      %84 = arith.divf %82, %83 : vector<8x128xf32>
      %85 = vector.extract_strided_slice %60 {offsets = [0, 256], sizes = [8, 128], strides = [1, 1]} : vector<8x384xf32> to vector<8x128xf32>
      %c0_52 = arith.constant 0 : index
      %c0_53 = arith.constant 0 : index
      %86 = vector.load %arg14[%c0_52, %c0_53] : memref<1x128xf32, #tpu.memory_space<vmem>>, vector<1x128xf32>
      %87 = vector.broadcast %86 : vector<1x128xf32> to vector<8x128xf32>
      %88 = arith.addf %85, %87 : vector<8x128xf32>
      %89 = vector.extract_strided_slice %62 {offsets = [0, 256], sizes = [8, 128], strides = [1, 1]} : vector<8x384xf32> to vector<8x128xf32>
      %c0_54 = arith.constant 0 : index
      %c0_55 = arith.constant 0 : index
      %90 = vector.load %arg15[%c0_54, %c0_55] : memref<1x128xf32, #tpu.memory_space<vmem>>, vector<1x128xf32>
      %91 = vector.broadcast %90 : vector<1x128xf32> to vector<8x128xf32>
      %92 = arith.addf %89, %91 : vector<8x128xf32>
      %93 = arith.mulf %73, %92 : vector<8x128xf32>
      %94 = arith.addf %88, %93 : vector<8x128xf32>
      %95 = math.tanh %94 : vector<8x128xf32>
      %cst_56 = arith.constant 1.000000e+00 : f32
      %96 = vector.broadcast %cst_56 : f32 to vector<8x128xf32>
      %97 = arith.subf %96, %84 : vector<8x128xf32>
      %98 = arith.mulf %97, %95 : vector<8x128xf32>
      %99 = arith.mulf %84, %0 : vector<8x128xf32>
      %100 = arith.addf %98, %99 : vector<8x128xf32>
      %c0_57 = arith.constant 0 : index
      %c0_58 = arith.constant 0 : index
      %101 = vector.load %arg16[%c0_57, %c0_58] : memref<8x128xf32, #tpu.memory_space<vmem>>, vector<8x128xf32>
      tpu.vector_store %arg16[%c0_57, %c0_58], %100 {strides = array<i32>} : memref<8x128xf32, #tpu.memory_space<vmem>>, vector<8x128xf32>,
      %102 = arith.truncf %100 : vector<8x128xf32> to vector<8x128xbf16>
      %c0_59 = arith.constant 0 : index
      %c0_60 = arith.constant 0 : index
      %103 = vector.load %arg17[%c0_59, %c0_60] : memref<8x384xbf16, #tpu.memory_space<vmem>>, vector<8x128xbf16>
      tpu.vector_store %arg17[%c0_59, %c0_60], %102 {strides = array<i32>} : memref<8x384xbf16, #tpu.memory_space<vmem>>, vector<8x128xbf16>,
      %c0_61 = arith.constant 0 : index
      %c128 = arith.constant 128 : index
      %104 = vector.load %arg17[%c0_61, %c128] : memref<8x384xbf16, #tpu.memory_space<vmem>>, vector<8x128xbf16>
      tpu.vector_store %arg17[%c0_61, %c128], %54 {strides = array<i32>} : memref<8x384xbf16, #tpu.memory_space<vmem>>, vector<8x128xbf16>,
      %c0_62 = arith.constant 0 : index
      %c256 = arith.constant 256 : index
      %105 = vector.load %arg17[%c0_62, %c256] : memref<8x384xbf16, #tpu.memory_space<vmem>>, vector<8x128xbf16>
      tpu.vector_store %arg17[%c0_62, %c256], %55 {strides = array<i32>} : memref<8x384xbf16, #tpu.memory_space<vmem>>, vector<8x128xbf16>,
    } else {
    }
    return
  }
  func.func @transform_0(%arg0: i32) -> (i32, i32) {
    %c0_i32 = arith.constant 0 : i32
    %c0_i32_0 = arith.constant 0 : i32
    %c0_i32_1 = arith.constant 0 : i32
    return %c0_i32, %c0_i32_0 : i32, i32
  }
  func.func @transform_1(%arg0: i32) -> (i32, i32) {
    %c0_i32 = arith.constant 0 : i32
    %c0_i32_0 = arith.constant 0 : i32
    %c0_i32_1 = arith.constant 0 : i32
    return %c0_i32, %c0_i32_0 : i32, i32
  }
  func.func @transform_2(%arg0: i32) -> (i32, i32, i32) {
    %c0_i32 = arith.constant 0 : i32
    %c0_i32_0 = arith.constant 0 : i32
    %c0_i32_1 = arith.constant 0 : i32
    return %arg0, %c0_i32, %c0_i32_0 : i32, i32, i32
  }
  func.func @transform_3(%arg0: i32) -> (i32, i32, i32) {
    %c0_i32 = arith.constant 0 : i32
    %c0_i32_0 = arith.constant 0 : i32
    %c0_i32_1 = arith.constant 0 : i32
    return %arg0, %c0_i32, %c0_i32_0 : i32, i32, i32
  }
  func.func @transform_4(%arg0: i32) -> (i32, i32) {
    %c0_i32 = arith.constant 0 : i32
    %c0_i32_0 = arith.constant 0 : i32
    %c0_i32_1 = arith.constant 0 : i32
    return %c0_i32, %c0_i32_0 : i32, i32
  }
  func.func @transform_5(%arg0: i32) -> (i32, i32) {
    %c0_i32 = arith.constant 0 : i32
    %c0_i32_0 = arith.constant 0 : i32
    %c0_i32_1 = arith.constant 0 : i32
    return %c0_i32, %c0_i32_0 : i32, i32
  }
  func.func @transform_6(%arg0: i32) -> (i32, i32) {
    %c0_i32 = arith.constant 0 : i32
    %c0_i32_0 = arith.constant 0 : i32
    %c0_i32_1 = arith.constant 0 : i32
    return %c0_i32, %c0_i32_0 : i32, i32
  }
  func.func @transform_7(%arg0: i32) -> (i32, i32) {
    %c0_i32 = arith.constant 0 : i32
    %c0_i32_0 = arith.constant 0 : i32
    %c0_i32_1 = arith.constant 0 : i32
    return %c0_i32, %c0_i32_0 : i32, i32
  }
  func.func @transform_8(%arg0: i32) -> (i32, i32) {
    %c0_i32 = arith.constant 0 : i32
    %c0_i32_0 = arith.constant 0 : i32
    %c0_i32_1 = arith.constant 0 : i32
    return %c0_i32, %c0_i32_0 : i32, i32
  }
  func.func @transform_9(%arg0: i32) -> (i32, i32) {
    %c0_i32 = arith.constant 0 : i32
    %c0_i32_0 = arith.constant 0 : i32
    %c0_i32_1 = arith.constant 0 : i32
    return %c0_i32, %c0_i32_0 : i32, i32
  }
  func.func @transform_10(%arg0: i32) -> (i32, i32) {
    %c0_i32 = arith.constant 0 : i32
    %c0_i32_0 = arith.constant 0 : i32
    %c0_i32_1 = arith.constant 0 : i32
    return %c0_i32, %c0_i32_0 : i32, i32
  }
  func.func @transform_11(%arg0: i32) -> (i32, i32) {
    %c0_i32 = arith.constant 0 : i32
    %c0_i32_0 = arith.constant 0 : i32
    %c0_i32_1 = arith.constant 0 : i32
    return %c0_i32, %c0_i32_0 : i32, i32
  }
  func.func @transform_12(%arg0: i32) -> (i32, i32) {
    %c0_i32 = arith.constant 0 : i32
    %c0_i32_0 = arith.constant 0 : i32
    %c0_i32_1 = arith.constant 0 : i32
    return %c0_i32, %c0_i32_0 : i32, i32
  }
  func.func @transform_13(%arg0: i32) -> (i32, i32) {
    %c0_i32 = arith.constant 0 : i32
    %c0_i32_0 = arith.constant 0 : i32
    %c0_i32_1 = arith.constant 0 : i32
    return %c0_i32, %c0_i32_0 : i32, i32
  }
  func.func @transform_14(%arg0: i32) -> (i32, i32) {
    %c0_i32 = arith.constant 0 : i32
    %c0_i32_0 = arith.constant 0 : i32
    %c0_i32_1 = arith.constant 0 : i32
    return %c0_i32, %c0_i32_0 : i32, i32
  }
  func.func @transform_15(%arg0: i32) -> (i32, i32) {
    %c0_i32 = arith.constant 0 : i32
    %c0_i32_0 = arith.constant 0 : i32
    %c0_i32_1 = arith.constant 0 : i32
    return %c0_i32, %c0_i32_0 : i32, i32
  }
  func.func @transform_16(%arg0: i32) -> (i32, i32) {
    %c0_i32 = arith.constant 0 : i32
    %c0_i32_0 = arith.constant 0 : i32
    %c0_i32_1 = arith.constant 0 : i32
    return %c0_i32, %c0_i32_0 : i32, i32
  }
}

</mosaic_0001>

<bundles_post_ra>
// kernel: tpu_custom_call.1
= control target key start
LH: loop header
LB: loop body
LE: loop exit
PB: predicated region body
PF: predicated region fallthrough
CT: control target
= control target key end

     0   :  { %s3491_s0 = inlined_call_operand.vmem [shape: bf16[8,128], index: 0, kind: input, shape index: {}]   ;;  %s3492_s1 = inlined_call_operand.hbm [shape: f32[8,128], index: 1, kind: input, shape index: {}, may-alias: {1,15}]   ;;  %s3493_s2 = inlined_call_operand.vmem [shape: bf16[16,8,128], index: 2, kind: input, shape index: {}]   ;;  %s3494_s3 = inlined_call_operand.vmem [shape: f32[16,8,1], index: 3, kind: input, shape index: {}]   ;;  %s3495_s4 = inlined_call_operand.vmem [shape: bf16[128,128], index: 4, kind: input, shape index: {}]   ;;  %s3496_s5 = inlined_call_operand.hbm [shape: bf16[128,128], index: 5, kind: input, shape index: {}]   ;;  %s3497_s6 = inlined_call_operand.vmem [shape: f32[1,128], index: 6, kind: input, shape index: {}]   ;;  %s3498_s7 = inlined_call_operand.hbm [shape: bf16[128,128], index: 7, kind: input, shape index: {}]   ;;  %s3499_s8 = inlined_call_operand.hbm [shape: bf16[128,384], index: 8, kind: input, shape index: {}]   ;;  %s3500_s9 = inlined_call_operand.hbm [shape: bf16[128,384], index: 9, kind: input, shape index: {}]   ;;  %s3501_s10 = inlined_call_operand.hbm [shape: bf16[128,384], index: 10, kind: input, shape index: {}]   ;;  %s3502_s11 = inlined_call_operand.vmem [shape: f32[1,128], index: 11, kind: input, shape index: {}]   ;;  %s3503_s12 = inlined_call_operand.vmem [shape: f32[1,128], index: 12, kind: input, shape index: {}]   ;;  %s3504_s13 = inlined_call_operand.vmem [shape: f32[1,128], index: 13, kind: input, shape index: {}]   ;;  %s3505_s14 = inlined_call_operand.vmem [shape: f32[1,128], index: 14, kind: input, shape index: {}]   ;;  %s3506_s15 = inlined_call_operand.hbm [shape: f32[8,128], index: 15, kind: output, shape index: {0}, may-alias: {1,15}]   ;;  %s3507_s16 = inlined_call_operand.hbm [shape: bf16[8,384], index: 16, kind: output, shape index: {1}]  }
   0x1   :  { %3519 = sst [smem:[#allocation27_spill]] %s3491_s0 }
   0x2   :  { %3520 = sst [smem:[#allocation28_spill]] %s3496_s5 }
   0x3   :  { %3521 = sst [smem:[#allocation29_spill]] %s3504_s13 }
   0x4   :  { %3522 = sst [smem:[#allocation30_spill]] %s3506_s15 }
   0x5   :  { %3523 = sst [smem:[#allocation31_spill]] %s3507_s16 }
   0x6   :  { %22 = vsyncpa [#allocation7], 0 }
   0x7   :  { %23 = vsyncpa [#allocation10], 0 }
   0x8   :  { %24 = vsyncpa [#allocation13], 0 }
   0x9   :  { %25 = vsyncpa [#allocation16], 0 }
   0xa   :  { %26 = vsyncpa [#allocation8], 0 }
   0xb   :  { %27 = vsyncpa [#allocation19], 0  ;;  %s3095_s21 = smov 0  }
   0xc LB: > { %3524 = sst [smem:[#allocation26_spill]] %s2989_s21  ;;  %s2991_s22 = smov [#allocation9]   ;;  %s2989_s21 = sphi %s3095_s21, %s33_s21  }
   0xd   : > { %s434_s23 = sshll.u32 %s2991_s22, 4  ;;  %s3101_s24 = sadd.s32 4294967295, %s2989_s21   ;;  %s3107_s23 = int_to_ptr.vmem [resolvable:$true] %s434_s23 }
   0xe   : > { %p2141_p0 = scmp.ge.s32.totalorder %s2989_s21, 1  ;;  %p405_p1 = scmp.lt.s32.totalorder %s2989_s21, 3 }
   0xf   : > { %p3513_p3 = scmp.eq.s32.totalorder %s3101_s24, 0  ;;  %s2992_s26 = smov [#allocation12]  }
  0x10   : > { %p3109_p4 = pnand %p2141_p0, %p405_p1  ;;  %s463_s27 = sshll.u32 %s2992_s26, 4  ;;  %s3115_s27 = int_to_ptr.vmem [resolvable:$true] %s463_s27 }
  0x11   : > { %s2993_s29 = smov [#allocation6]   ;;  %s3527_s5 = sld [smem:[#allocation28_spill]] }
  0x12   : > { %s3525_s25 = scalar_select %p3109_p4, 1, 0 }
  0x13   : > { %p2500_p5 = pneg %p3109_p4  ;;  %s3123_s30 = sshll.u32 %s2993_s29, 4  ;;  %s422_s30 = int_to_ptr.vmem [resolvable:$true] %s3123_s30 }
  0x15   : > { %p3119_p6 = pnand %p3513_p3, %p2500_p5 }
  0x17   : > { %s2739_s18 = scalar_lea.hbm %s3527_s5, 1024  ;;  %p3133_p8 = pneg %p3119_p6 }
  0x18   : > { %p2740_p7 = scmp.ne.s32.totalorder %s3527_s5, %s2739_s18  ;;  %p2746_p11 = scmp.lt.u32.totalorder %s2739_s18, %s3527_s5 }
  0x1a   : > { %p2742_p9 = pnand %p3133_p8, %p2740_p7 }
  0x1c   : > { %p2743_p10 = pneg %p2742_p9 }
  0x1e   : > { %p2748_p12 = pnand %p2746_p11, %p2743_p10 }
  0x20   : > { %2751 = shalt.err (!%p2748_p12)
}
  0x21   : > { %s2752_s0 = scalar_lea.vmem %s3107_s23, 1024  ;;  %p2760_p5 = scmp.lt.s32.totalorder %s3107_s23, %s3107_s23 }
  0x22   : > { %p2753_p13 = scmp.ne.s32.totalorder %s3107_s23, %s2752_s0  ;;  %p2761_p2 = scmp.lt.s32.totalorder %s2752_s0, %s2752_s0 }
  0x24   : > { %p2755_p0 = pnand %p2753_p13, %p3133_p8  ;;  %p2762_p7 = por %p2761_p2, %p2760_p5 }
  0x26   : > { %p2756_p1 = pneg %p2755_p0 }
  0x28   : > { %p2763_p9 = pnand %p2762_p7, %p2756_p1 }
  0x2a   : > { %2766 = shalt.err (!%p2763_p9)
}
  0x2b   : > { %s3511_s17 = smov 64   ;;  %s3512_s18 = smov 4  }
  0x2c   : > { %2506 = dma.hbm_to_vmem [thread:$0]  (!%p3119_p6), %s3527_s5, 1024, %s3107_s23, [#allocation10], %s3511_s17, %s3511_s17, %s3512_s18  }
  0x2d   : > { %s2767_s0 = scalar_lea.hbm %s3499_s8, 3072 }
  0x2e   : > { %p2768_p2 = scmp.ne.s32.totalorder %s3499_s8, %s2767_s0  ;;  %p2774_p12 = scmp.lt.u32.totalorder %s2767_s0, %s3499_s8 }
  0x30   : > { %p2770_p10 = pnand %p2768_p2, %p3133_p8 }
  0x32   : > { %p2771_p11 = pneg %p2770_p10 }
  0x34   : > { %p2776_p13 = pnand %p2774_p12, %p2771_p11 }
  0x36   : > { %2779 = shalt.err (!%p2776_p13)
}
  0x37   : > { %s2780_s23 = scalar_lea.vmem %s3115_s27, 3072  ;;  %p2788_p7 = scmp.lt.s32.totalorder %s3115_s27, %s3115_s27 }
  0x38   : > { %p2781_p0 = scmp.ne.s32.totalorder %s3115_s27, %s2780_s23  ;;  %p2789_p9 = scmp.lt.s32.totalorder %s2780_s23, %s2780_s23 }
  0x3a   : > { %p2783_p1 = pnand %p2781_p0, %p3133_p8  ;;  %p2790_p2 = por %p2789_p9, %p2788_p7 }
  0x3c   : > { %p2784_p5 = pneg %p2783_p1 }
  0x3e   : > { %p2791_p10 = pnand %p2790_p2, %p2784_p5 }
  0x40   : > { %2794 = shalt.err (!%p2791_p10)
}
  0x41   : > { %s3515_s16 = smov 192   ;;  %s3517_s13 = smov 12  }
  0x42   : > { %2512 = dma.hbm_to_vmem [thread:$0]  (!%p3119_p6), %s3499_s8, 3072, %s3115_s27, [#allocation13], %s3515_s16, %s3515_s16, %s3517_s13  }
  0x43   : > { %s2998_s19 = smov [#allocation11]   ;;  %s2795_s0 = scalar_lea.hbm %s3492_s1, 128 }
  0x44   : > { %s450_s20 = sshll.u32 %s2998_s19, 4  ;;  %p2796_p11 = scmp.ne.s32.totalorder %s3492_s1, %s2795_s0  ;;  %s451_s20 = int_to_ptr.vmem [resolvable:$true] %s450_s20 }
  0x45   : > { %p2802_p0 = scmp.lt.u32.totalorder %s2795_s0, %s3492_s1 }
  0x46   : > { %p2798_p12 = pnand %p2796_p11, %p3133_p8 }
  0x48   : > { %p2799_p13 = pneg %p2798_p12 }
  0x4a   : > { %p2804_p1 = pnand %p2802_p0, %p2799_p13 }
  0x4c   : > { %2807 = shalt.err (!%p2804_p1)
}
  0x4d   : > { %s2808_s27 = scalar_lea.vmem %s422_s30, 128  ;;  %p2816_p2 = scmp.lt.s32.totalorder %s422_s30, %s422_s30 }
  0x4e   : > { %p2809_p5 = scmp.ne.s32.totalorder %s422_s30, %s2808_s27  ;;  %p2817_p10 = scmp.lt.s32.totalorder %s2808_s27, %s2808_s27 }
  0x50   : > { %p2811_p7 = pnand %p2809_p5, %p3133_p8  ;;  %p2818_p3 = por %p2817_p10, %p2816_p2 }
  0x52   : > { %p2812_p9 = pneg %p2811_p7 }
  0x54   : > { %p2819_p4 = pnand %p2818_p3, %p2812_p9 }
  0x56   : > { %2822 = shalt.err (!%p2819_p4)
}
  0x57   : > { %2503 = dma.hbm_to_vmem [thread:$0]  (!%p3119_p6), %s3492_s1, 128, %s422_s30, [#allocation7]  }
  0x58   : > { %s2823_s21 = scalar_lea.hbm %s3498_s7, 1024 }
  0x59   : > { %p2824_p11 = scmp.ne.s32.totalorder %s3498_s7, %s2823_s21  ;;  %p2830_p4 = scmp.lt.u32.totalorder %s2823_s21, %s3498_s7 }
  0x5b   : > { %p2826_p12 = pnand %p2824_p11, %p3133_p8 }
  0x5d   : > { %p2827_p3 = pneg %p2826_p12 }
  0x5f   : > { %p2832_p13 = pnand %p2830_p4, %p2827_p3 }
  0x61   : > { %2835 = shalt.err (!%p2832_p13)
}
  0x62   : > { %s2836_s23 = scalar_lea.vmem %s451_s20, 1024  ;;  %p2844_p7 = scmp.lt.s32.totalorder %s451_s20, %s451_s20 }
  0x63   : > { %p2837_p0 = scmp.ne.s32.totalorder %s451_s20, %s2836_s23  ;;  %p2845_p9 = scmp.lt.s32.totalorder %s2836_s23, %s2836_s23 }
  0x65   : > { %p2839_p1 = pnand %p2837_p0, %p3133_p8  ;;  %p2846_p2 = por %p2845_p9, %p2844_p7 }
  0x67   : > { %p2840_p5 = pneg %p2839_p1 }
  0x69   : > { %p2847_p10 = pnand %p2846_p2, %p2840_p5 }
  0x6b   : > { %2850 = shalt.err (!%p2847_p10)
}
  0x6c   : > { %s3529_s30 = smov 4   ;;  %s3530_s27 = smov 64  }
  0x6d   : > { %2509 = dma.hbm_to_vmem [thread:$0]  (!%p3119_p6), %s3498_s7, 1024, %s451_s20, [#allocation10], %s3530_s27, %s3530_s27, %s3529_s30  }
  0x6e   : > { %s2999_s5 = smov [#allocation14]   ;;  %s3000_s21 = smov [#allocation15]  }
  0x6f   : > { %s476_s18 = sshll.u32 %s2999_s5, 4  ;;  %s489_s19 = sshll.u32 %s3000_s21, 4  ;;  %s477_s18 = int_to_ptr.vmem [resolvable:$true] %s476_s18  ;;  %s490_s19 = int_to_ptr.vmem [resolvable:$true] %s489_s19 }
  0x70   : > { %s2851_s0 = scalar_lea.hbm %s3500_s9, 3072 }
  0x71   : > { %p2852_p11 = scmp.ne.s32.totalorder %s3500_s9, %s2851_s0  ;;  %p2858_p4 = scmp.lt.u32.totalorder %s2851_s0, %s3500_s9 }
  0x73   : > { %p2854_p12 = pnand %p2852_p11, %p3133_p8 }
  0x75   : > { %p2855_p3 = pneg %p2854_p12 }
  0x77   : > { %p2860_p13 = pnand %p2858_p4, %p2855_p3 }
  0x79   : > { %2863 = shalt.err (!%p2860_p13)
}
  0x7a   : > { %s2864_s20 = scalar_lea.vmem %s477_s18, 3072  ;;  %p2872_p7 = scmp.lt.s32.totalorder %s477_s18, %s477_s18 }
  0x7b   : > { %p2865_p0 = scmp.ne.s32.totalorder %s477_s18, %s2864_s20  ;;  %p2873_p9 = scmp.lt.s32.totalorder %s2864_s20, %s2864_s20 }
  0x7d   : > { %p2867_p1 = pnand %p2865_p0, %p3133_p8  ;;  %p2874_p2 = por %p2873_p9, %p2872_p7 }
  0x7f   : > { %p2868_p5 = pneg %p2867_p1 }
  0x81   : > { %p2875_p10 = pnand %p2874_p2, %p2868_p5 }
  0x83   : > { %2878 = shalt.err (!%p2875_p10)
}
  0x84   : > { %s3531_s16 = smov 12   ;;  %s3532_s30 = smov 192  }
  0x85   : > { %2515 = dma.hbm_to_vmem [thread:$0]  (!%p3119_p6), %s3500_s9, 3072, %s477_s18, [#allocation13], %s3532_s30, %s3532_s30, %s3531_s16  }
  0x86   : > { %s2879_s21 = scalar_lea.hbm %s3501_s10, 3072 }
  0x87   : > { %p2880_p11 = scmp.ne.s32.totalorder %s3501_s10, %s2879_s21  ;;  %p2886_p4 = scmp.lt.u32.totalorder %s2879_s21, %s3501_s10 }
  0x89   : > { %p2882_p12 = pnand %p2880_p11, %p3133_p8 }
  0x8b   : > { %p2883_p3 = pneg %p2882_p12 }
  0x8d   : > { %p2888_p13 = pnand %p2886_p4, %p2883_p3 }
  0x8f   : > { %2891 = shalt.err (!%p2888_p13)
}
  0x90   : > { %s2892_s17 = scalar_lea.vmem %s490_s19, 3072  ;;  %p2900_p7 = scmp.lt.s32.totalorder %s490_s19, %s490_s19 }
  0x91   : > { %p2893_p0 = scmp.ne.s32.totalorder %s490_s19, %s2892_s17  ;;  %p2901_p9 = scmp.lt.s32.totalorder %s2892_s17, %s2892_s17 }
  0x93   : > { %p2895_p1 = pnand %p2893_p0, %p3133_p8  ;;  %p2902_p2 = por %p2901_p9, %p2900_p7 }
  0x95   : > { %p2896_p5 = pneg %p2895_p1 }
  0x97   : > { %p2903_p10 = pnand %p2902_p2, %p2896_p5 }
  0x99   : > { %2906 = shalt.err (!%p2903_p10)
}
  0x9a   : > { %2518 = dma.hbm_to_vmem [thread:$0]  (!%p3119_p6), %s3501_s10, 3072, %s490_s19, [#allocation16], %s3532_s30, %s3532_s30, %s3531_s16  }
  0x9b   : > { %p3533_p11 = scmp.ne.s32.totalorder %s3525_s25, 0 }
  0x9c   : > { %p3534_p8 = scmp.eq.s32.totalorder (!%p3533_p11), %s3101_s24, 0 }
  0x9d   : > { %535 = sbr.rel (%p3533_p11) target bundleno = 1494 (0x5d6), region = 80 }
  0xa4   : > { %2964 = dma.done.wait (%p3534_p8), [#allocation7], 128   ;;  %p3535_p12 = pmov %p3534_p8 }
  0xa5   : > { %p3536_p3 = pmov %p3534_p8 }
  0xa6   : > { %2966 = vsyncadd (%p3535_p12), [#allocation7], 4294967168 }
  0xa7   : > { %2968 = dma.done.wait (%p3536_p3), [#allocation10], 2048   ;;  %p3537_p4 = pmov %p3536_p3 }
  0xa8   : > { %p3538_p13 = pmov %p3536_p3 }
  0xa9   : > { %2970 = vsyncadd (%p3537_p4), [#allocation10], 4294965248 }
  0xaa   : > { %2972 = dma.done.wait (%p3538_p13), [#allocation13], 6144   ;;  %p3539_p6 = pmov %p3536_p3 }
  0xab   : > { %p3540_p0 = pmov %p3536_p3 }
  0xac   : > { %2974 = vsyncadd (%p3539_p6), [#allocation13], 4294961152 }
  0xad   : > { %2976 = dma.done.wait (%p3540_p0), [#allocation16], 3072   ;;  %p3541_p1 = pmov %p3540_p0 }
  0xae   : > { %s2156_s25 = sshll.u32 %s3101_s24, 3  ;;  %v3294_v0 = vld [vmem:[#allocation6] sm:$0xff]  ;;  %p3542_p7 = scmp.ne.s32.totalorder %s3101_s24, 0 }
  0xaf   : > { %2978 = vsyncadd (%p3541_p1), [#allocation16], 4294964224  ;;  %p606_p5 = scmp.lt.s32.totalorder %s2156_s25, 15  ;;  %v3298_v1 = vpack.c.bf16 %v3294_v0, %v3294_v0  ;;  %vm736_vm0 = vcmask (!%p3542_p7), 7168   ;;  %v3001_v2 = vmov (!%p3542_p7), 0.0   ;;  %v2562_v4 = vld [vmem:[%s3495_s4] sm:$0xff] (!%p3542_p7)  }
  0xb0   : > { %623 = sbr.rel (%p3542_p7) target bundleno = 423 (0x1a7), region = 108  ;;  %2340 = vmatprep.subr.bf16.mxu0 (!%p3542_p7), %v3001_v2  ;;  %v3002_v3 = vmov (!%p3542_p7), -1e+30   ;;  %738 = vst.msk [vmem:[#allocation4] sm:$0xff] (!%p3542_p7), %vm736_vm0, %v3001_v2  ;;  %739 = vst [vmem:[#allocation5] sm:$0xff] (!%p3542_p7), %v3001_v2  ;;  %vm3003_vm1 = vmmov (!%p3542_p7), 0  }
  0xb1   : > { %s3549_s25 = smov (!%p606_p5, %s2156_s25), 15  ;;  %737 = vst.msk [vmem:[#allocation3] sm:$0xff] (!%p3542_p7), %vm736_vm0, %v3002_v3  ;;  %2356 = vmatprep.mubr.msk.bf16.mxu0 (!%p3542_p7), %vm3003_vm1, %v3001_v2  ;;  %2341 = vmatpush3.bf16.msra.mxu0 (!%p3542_p7), %v2562_v4  ;;  %v2563_v5 = vld [vmem:[%s3495_s4 + $0x8] sm:$0xff] (!%p3542_p7)   ;;  %v2564_v6 = vld [vmem:[%s3495_s4 + $0x10] sm:$0xff] (!%p3542_p7)   ;;  %v2565_v7 = vld [vmem:[%s3495_s4 + $0x18] sm:$0xff] (!%p3542_p7)  }
  0xb2   : > { %s2157_s28 = sshll.u32 %s3549_s25, 2  ;;  %s2159_s22 = sshll.u32 %s3549_s25, 3  ;;  %2342 = vmatprep.subr.bf16.mxu0 (!%p3542_p7), %v3001_v2  ;;  %v2566_v8 = vld [vmem:[%s3495_s4 + $0x20] sm:$0xff] (!%p3542_p7)   ;;  %v2567_v9 = vld [vmem:[%s3495_s4 + $0x28] sm:$0xff] (!%p3542_p7)   ;;  %v2568_v10 = vld [vmem:[%s3495_s4 + $0x30] sm:$0xff] (!%p3542_p7)  }
  0xb3   : > { %s3287_s30 = scalar_lea.vmem %s3493_s2, %s2157_s28  ;;  %s3292_s15 = scalar_lea.vmem %s3494_s3, %s2159_s22  ;;  %v2569_v11 = vld [vmem:[%s3495_s4 + $0x38] sm:$0xff] (!%p3542_p7)   ;;  %v2161_v12 = vld [vmem:[%s3497_s6] ss:$0 sm:$0xff] (!%p3542_p7) }
  0xb5   : > { %2343 = vmatpush3.bf16.msra.mxu0 (!%p3542_p7), %v2563_v5 }
  0xb6   : > { %2344 = vmatprep.subr.bf16.mxu0 (!%p3542_p7), %v3001_v2 }
  0xb9   : > { %2345 = vmatpush3.bf16.msra.mxu0 %v2564_v6 }
  0xba   : > { %2346 = vmatprep.subr.bf16.mxu0 %v3001_v2 }
  0xbd   : > { %2347 = vmatpush3.bf16.msra.mxu0 %v2565_v7 }
  0xbe   : > { %2348 = vmatprep.subr.bf16.mxu0 %v3001_v2 }
  0xc1   : > { %2349 = vmatpush3.bf16.msra.mxu0 %v2566_v8 }
  0xc2   : > { %2350 = vmatprep.subr.bf16.mxu0 %v3001_v2 }
  0xc5   : > { %2351 = vmatpush3.bf16.msra.mxu0 %v2567_v9 }
  0xc6   : > { %2352 = vmatprep.subr.bf16.mxu0 %v3001_v2 }
  0xc9   : > { %2353 = vmatpush3.bf16.msra.mxu0 %v2568_v10 }
  0xca   : > { %2354 = vmatprep.subr.bf16.mxu0 %v3001_v2 }
  0xcd   : > { %2355 = vmatpush3.bf16.msra.mxu0 %v2569_v11 }
  0xd0   : > { %2357 = vmatmul.mubr.bf16.vlgmr.msra.gmra.mrb[0].mxu0 %v3298_v1 }
 0x1a3   : > { %v729_v13 = vpop.f32.mrb[0].mxu0 }
 0x1a4   : > { %v730_v14 = vadd.f32 %v2161_v12, %v729_v13  ;;  %v2358_v15 = vpop.f32.mrb[1].mxu0 }
 0x1a5   : > { %v732_v16 = vpop.f32.mrb[2].mxu0 }
 0x1a6   : > { %735 = vst [vmem:[#allocation2] sm:$0xff] %v730_v14  ;;  %v2359_v17 = vpop.f32.mrb[3].mxu0 }
 0x1a7 PF: > { %v2572_v18 = vld [vmem:[#allocation9] sm:$0xff]   ;;  %v2573_v19 = vld [vmem:[#allocation9 + $0x8] sm:$0xff]   ;;  %v2574_v20 = vld [vmem:[#allocation9 + $0x10] sm:$0xff]   ;;  %v3004_v5 = vmov 0   ;;  %vm1068_vm2 = vcmask 7168   ;;  %p2190_p9 = scmp.ne.s32.totalorder %s3101_s24, 1 }
 0x1a8   : > { %2360 = vmatprep.subr.bf16.mxu0 %v2572_v18  ;;  %v2575_v21 = vld [vmem:[#allocation9 + $0x18] sm:$0xff]   ;;  %v2576_v23 = vld [vmem:[#allocation9 + $0x20] sm:$0xff]   ;;  %v2585_v25 = vld [vmem:[#allocation11 + $0x8] sm:$0xff]   ;;  %2571 = vset.pattern.permute.xlu1 %v3004_v5  ;;  %vm3007_vm3 = vmmov (!%p2190_p9), 0   ;;  %s3543_s26 = sld [smem:[#allocation27_spill]] (!%p2190_p9)  ;;  %s3544_s22 = sld [smem:[#allocation29_spill]] (!%p2190_p9) }
 0x1a9   : > { %2361 = vmatpush3.bf16.msra.mxu0 %v2572_v18  ;;  %v3331_v22 = vld [vmem:[%s3287_s30] sm:$0xff]   ;;  %v2584_v24 = vld [vmem:[#allocation11] sm:$0xff]   ;;  %v2586_v26 = vld [vmem:[#allocation11 + $0x10] sm:$0xff]   ;;  %2570 = vset.pattern.permute.xlu0 %v3004_v5 }
 0x1aa   : > { %2362 = vmatprep.subr.bf16.mxu0 %v2573_v19  ;;  %2376 = vmatprep.mubr.bf16.mxu0 %v3331_v22  ;;  %v2577_v27 = vld [vmem:[#allocation9 + $0x28] sm:$0xff]   ;;  %v2578_v28 = vld [vmem:[#allocation9 + $0x30] sm:$0xff]   ;;  %v2579_v29 = vld [vmem:[#allocation9 + $0x38] sm:$0xff]  }
 0x1ab   : > { %2384 = vmatprep.subr.bf16.mxu1 %v2584_v24  ;;  %v3335_v30 = vld [vmem:[%s3287_s30 + $0x8] sm:$0xff]   ;;  %v3338_v31 = vld [vmem:[%s3287_s30 + $0x10] sm:$0xff]   ;;  %v3343_v32 = vld [vmem:[%s3287_s30 + $0x18] sm:$0xff]  }
 0x1ac   : > { %2385 = vmatpush3.bf16.msra.mxu1 %v2584_v24  ;;  %v2587_v33 = vld [vmem:[#allocation11 + $0x18] sm:$0xff]   ;;  %v2588_v34 = vld [vmem:[#allocation11 + $0x20] sm:$0xff]   ;;  %v2589_v35 = vld [vmem:[#allocation11 + $0x28] sm:$0xff]  }
 0x1ad   : > { %2363 = vmatpush3.bf16.msra.mxu0 %v2573_v19  ;;  %2386 = vmatprep.subr.bf16.mxu1 %v2585_v25  ;;  %v2590_v36 = vld [vmem:[#allocation11 + $0x30] sm:$0xff]   ;;  %v2591_v37 = vld [vmem:[#allocation11 + $0x38] sm:$0xff]   ;;  %v1053_v10 = vld [vmem:[%s3292_s15 + $0x10] sm:$0xff] }
 0x1ae   : > { %2364 = vmatprep.subr.bf16.mxu0 %v2574_v20  ;;  %v901_v38 = vld [vmem:[#allocation2] sm:$0xff]  ;;  %v1054_v12 = vld [vmem:[%s3292_s15 + $0x18] sm:$0xff]  ;;  %v1057_v13 = vld [vmem:[%s3292_s15 + $0x30] sm:$0xff] }
 0x1af   : > { %v1051_v11 = vld [vmem:[%s3292_s15] sm:$0xff]  ;;  %v1052_v15 = vld [vmem:[%s3292_s15 + $0x8] sm:$0xff]  ;;  %v1058_v19 = vld [vmem:[%s3292_s15 + $0x38] sm:$0xff] }
 0x1b0   : > { %2387 = vmatpush3.bf16.msra.mxu1 %v2585_v25  ;;  %v1055_v16 = vld [vmem:[%s3292_s15 + $0x20] sm:$0xff]  ;;  %v1056_v24 = vld [vmem:[%s3292_s15 + $0x28] sm:$0xff] }
 0x1b1   : > { %2365 = vmatpush3.bf16.msra.mxu0 %v2574_v20  ;;  %2388 = vmatprep.subr.bf16.mxu1 %v2586_v26 }
 0x1b2   : > { %2366 = vmatprep.subr.bf16.mxu0 %v2575_v21 }
 0x1b4   : > { %2389 = vmatpush3.bf16.msra.mxu1 %v2586_v26 }
 0x1b5   : > { %2367 = vmatpush3.bf16.msra.mxu0 %v2575_v21  ;;  %2390 = vmatprep.subr.bf16.mxu1 %v2587_v33 }
 0x1b6   : > { %2368 = vmatprep.subr.bf16.mxu0 %v2576_v23 }
 0x1b8   : > { %2391 = vmatpush3.bf16.msra.mxu1 %v2587_v33 }
 0x1b9   : > { %2369 = vmatpush3.bf16.msra.mxu0 %v2576_v23  ;;  %2392 = vmatprep.subr.bf16.mxu1 %v2588_v34 }
 0x1ba   : > { %2370 = vmatprep.subr.bf16.mxu0 %v2577_v27 }
 0x1bc   : > { %2393 = vmatpush3.bf16.msra.mxu1 %v2588_v34 }
 0x1bd   : > { %2371 = vmatpush3.bf16.msra.mxu0 %v2577_v27  ;;  %2394 = vmatprep.subr.bf16.mxu1 %v2589_v35 }
 0x1be   : > { %2372 = vmatprep.subr.bf16.mxu0 %v2578_v28 }
 0x1c0   : > { %2395 = vmatpush3.bf16.msra.mxu1 %v2589_v35 }
 0x1c1   : > { %2373 = vmatpush3.bf16.msra.mxu0 %v2578_v28  ;;  %2396 = vmatprep.subr.bf16.mxu1 %v2590_v36 }
 0x1c2   : > { %2374 = vmatprep.subr.bf16.mxu0 %v2579_v29 }
 0x1c4   : > { %2397 = vmatpush3.bf16.msra.mxu1 %v2590_v36 }
 0x1c5   : > { %2375 = vmatpush3.bf16.msra.mxu0 %v2579_v29  ;;  %2398 = vmatprep.subr.bf16.mxu1 %v2591_v37 }
 0x1c8   : > { %2377 = vmatmul.mubr.bf16.vlgmr.msra.gmra.mrb[0].mxu0 %v3335_v30  ;;  %2399 = vmatpush3.bf16.msra.mxu1 %v2591_v37 }
 0x1c9   : > { %2380 = vmatprep.mubr.bf16.mxu0 %v3338_v31 }
 0x1d0   : > { %2381 = vmatmul.mubr.bf16.gmra.mrb[4].mxu0 %v3343_v32 }
 0x29b   : > { %v2378_v39 = vpop.f32.mrb[0].mxu0 }
 0x29c   : > { %v904_v40 = vadd.f32 %v2378_v39, %v901_v38  ;;  %v870_v41 = vpop.f32.mrb[1].mxu0 }
 0x29d   : > { %v902_v42 = vadd.f32 %v901_v38, %v870_v41  ;;  %v2379_v43 = vpop.f32.mrb[2].mxu0 }
 0x29e   : > { %2596 = vtanh.f32 %v904_v40  ;;  %v905_v44 = vadd.f32 %v2379_v43, %v901_v38  ;;  %v873_v45 = vpop.f32.mrb[3].mxu0 }
 0x29f   : > { %2598 = vtanh.f32 %v902_v42  ;;  %v903_v46 = vadd.f32 %v901_v38, %v873_v45 }
 0x2a0   : > { %2600 = vtanh.f32 %v905_v44 }
 0x2a1   : > { %2602 = vtanh.f32 %v903_v46 }
 0x2a3   : > { %v2382_v47 = vpop.f32.mrb[4].mxu0 }
 0x2a4   : > { %v908_v48 = vadd.f32 %v2382_v47, %v901_v38  ;;  %v886_v49 = vpop.f32.mrb[5].mxu0 }
 0x2a5   : > { %v906_v50 = vadd.f32 %v901_v38, %v886_v49  ;;  %v2383_v51 = vpop.f32.mrb[6].mxu0 }
 0x2a6   : > { %2604 = vtanh.f32 %v908_v48  ;;  %v909_v52 = vadd.f32 %v2383_v51, %v901_v38  ;;  %v889_v53 = vpop.f32.mrb[7].mxu0  ;;  %v1067_v48 = vld [vmem:[#allocation3] sm:$0xff] }
 0x2a7   : > { %2606 = vtanh.f32 %v906_v50  ;;  %v907_v54 = vadd.f32 %v901_v38, %v889_v53 }
 0x2a8   : > { %v2597_v55 = vpop.eup %2596  ;;  %2608 = vtanh.f32 %v909_v52 }
 0x2a9   : > { %v2599_v56 = vpop.eup %2598  ;;  %2610 = vtanh.f32 %v907_v54 }
 0x2aa   : > { %v2601_v57 = vpop.eup %2600 }
 0x2ab   : > { %v2603_v58 = vpop.eup %2602  ;;  %v919_v59 = vpack.c.bf16 %v2601_v57, %v2597_v55 }
 0x2ac   : > { %v918_v60 = vpack.c.bf16 %v2603_v58, %v2599_v56 }
 0x2ae   : > { %2400 = vmatprep.mubr.bf16.mxu1 %v918_v60 }
 0x2af   : > { %2401 = vmatmul.mubr.bf16.vlgmr.msra.gmra.mrb[0].mxu1 %v919_v59 }
 0x2b0   : > { %v2605_v61 = vpop.eup %2604 }
 0x2b1   : > { %v2607_v62 = vpop.eup %2606 }
 0x2b2   : > { %v2609_v63 = vpop.eup %2608 }
 0x2b3   : > { %v2611_v2 = vpop.eup %2610  ;;  %v921_v3 = vpack.c.bf16 %v2609_v63, %v2605_v61 }
 0x2b4   : > { %v920_v4 = vpack.c.bf16 %v2611_v2, %v2607_v62 }
 0x2b6   : > { %2404 = vmatprep.mubr.bf16.mxu1 %v920_v4 }
 0x2b7   : > { %2405 = vmatmul.mubr.bf16.gmra.mrb[4].mxu1 %v921_v3 }
 0x382   : > { %v2402_v6 = vpop.f32.mrb[0].mxu1 }
 0x383   : > { %v1020_v7 = vpop.f32.mrb[1].mxu1  ;;  %v1061_v14 = vadd.f32 %v2402_v6, %v1053_v10 }
 0x384   : > { %v2403_v8 = vpop.f32.mrb[2].mxu1  ;;  %v1059_v17 = vadd.f32 %v1051_v11, %v1020_v7 }
 0x385   : > { %v1023_v9 = vpop.f32.mrb[3].mxu1  ;;  %v1062_v20 = vadd.f32 %v2403_v8, %v1054_v12  ;;  %v1071_v28 = vsel %vm1068_vm2, %v1061_v14, -inf }
 0x386   : > { %v1060_v25 = vadd.f32 %v1052_v15, %v1023_v9  ;;  %v1069_v35 = vsel %vm1068_vm2, %v1059_v17, -inf }
 0x387   : > { %v1072_v39 = vsel %vm1068_vm2, %v1062_v20, -inf }
 0x388   : > { %v1070_v42 = vsel %vm1068_vm2, %v1060_v25, -inf }
 0x38a   : > { %v2406_v18 = vpop.f32.mrb[4].mxu1 }
 0x38b   : > { %v1065_v21 = vadd.f32 %v2406_v18, %v1057_v13  ;;  %v1036_v23 = vpop.f32.mrb[5].mxu1 }
 0x38c   : > { %v1063_v26 = vadd.f32 %v1055_v16, %v1036_v23  ;;  %v2407_v27 = vpop.f32.mrb[6].mxu1 }
 0x38d   : > { %v1077_v29 = vsel %vm1068_vm2, %v1065_v21, -inf  ;;  %v1066_v33 = vadd.f32 %v2407_v27, %v1058_v19  ;;  %v1039_v34 = vpop.f32.mrb[7].mxu1 }
 0x38e   : > { %v1078_v36 = vmax.f32 %v1071_v28, %v1077_v29  ;;  %v1073_v37 = vsel %vm1068_vm2, %v1063_v26, -inf  ;;  %v1064_v38 = vadd.f32 %v1056_v24, %v1039_v34  ;;  %v1112_v28 = vld [vmem:[#allocation4] sm:$0xff] }
 0x38f   : > { %v1074_v40 = vmax.f32 %v1069_v35, %v1073_v37  ;;  %v1079_v41 = vsel %vm1068_vm2, %v1066_v33, -inf }
 0x390   : > { %v1080_v43 = vmax.f32 %v1072_v39, %v1079_v41  ;;  %v1075_v44 = vsel %vm1068_vm2, %v1064_v38, -inf  ;;  %v1139_v41 = vunpack.c.h.bf16 %v3331_v22 }
 0x391   : > { %v1076_v45 = vmax.f32 %v1070_v42, %v1075_v44  ;;  %v1140_v42 = vunpack.c.l.bf16 %v3335_v30 }
 0x392   : > { %v1082_v46 = vmax.f32 %v1078_v36, %v1080_v43 }
 0x393   : > { %v1081_v47 = vmax.f32 %v1074_v40, %v1076_v45  ;;  %v1138_v40 = vunpack.c.l.bf16 %v3331_v22 }
 0x395   : > { %v1083_v49 = vmax.f32 %v1081_v47, %v1082_v46  ;;  %v1141_v46 = vunpack.c.h.bf16 %v3335_v30  ;;  %v1145_v30 = vunpack.c.h.bf16 %v3343_v32 }
 0x397   : > { %v1084_v50 = vmax.f32 %v1067_v48, %v1083_v49 }
 0x399   : > { %v1093_v51 = vsub.f32 %v1064_v38, %v1084_v50  ;;  %1203 = vst.msk [vmem:[#allocation3] sm:$0xff] %vm1068_vm2, %v1084_v50  ;;  %v1090_v52 = vsub.f32 %v1061_v14, %v1084_v50  ;;  %v1088_v53 = vsub.f32 %v1059_v17, %v1084_v50  ;;  %v1089_v54 = vsub.f32 %v1060_v25, %v1084_v50 }
 0x39a   : > { %v1091_v55 = vsub.f32 %v1062_v20, %v1084_v50  ;;  %v1092_v56 = vsub.f32 %v1063_v26, %v1084_v50  ;;  %v1094_v57 = vsub.f32 %v1065_v21, %v1084_v50  ;;  %v1095_v59 = vsub.f32 %v1066_v33, %v1084_v50 }
 0x39b   : > { %v1100_v58 = vmul.f32 1.442695, %v1090_v52  ;;  %v1096_v60 = vmul.f32 1.442695, %v1088_v53  ;;  %v1098_v61 = vmul.f32 1.442695, %v1089_v54  ;;  %v1085_v3 = vsub.f32 %v1067_v48, %v1084_v50 }
 0x39c   : > { %v1102_v62 = vmul.f32 1.442695, %v1091_v55  ;;  %v1104_v63 = vmul.f32 1.442695, %v1092_v56  ;;  %v1106_v2 = vmul.f32 1.442695, %v1093_v51  ;;  %v1142_v50 = vunpack.c.l.bf16 %v3338_v31 }
 0x39d   : > { %2612 = vpow2.f32 %v1100_v58  ;;  %v1108_v4 = vmul.f32 1.442695, %v1094_v57  ;;  %v1110_v5 = vmul.f32 1.442695, %v1095_v59  ;;  %v1086_v6 = vmul.f32 1.442695, %v1085_v3 }
 0x39e   : > { %2614 = vpow2.f32 %v1096_v60  ;;  %v1143_v55 = vunpack.c.h.bf16 %v3338_v31  ;;  %v1144_v57 = vunpack.c.l.bf16 %v3343_v32  ;;  %v3006_v32 = vmov (!%p2190_p9), 0.0  }
 0x39f   : > { %2616 = vpow2.f32 %v1098_v61  ;;  %2408 = vmatprep.subr.bf16.mxu1 (!%p2190_p9), %v3006_v32  ;;  %2424 = vmatprep.mubr.msk.bf16.mxu1 (!%p2190_p9), %vm3007_vm3, %v3006_v32 }
 0x3a0   : > { %2618 = vpow2.f32 %v1102_v62 }
 0x3a1   : > { %2620 = vpow2.f32 %v1104_v63 }
 0x3a2   : > { %2622 = vpow2.f32 %v1106_v2  ;;  %v1131_v2 = vld [vmem:[#allocation5] sm:$0xff] }
 0x3a3   : > { %2624 = vpow2.f32 %v1108_v4 }
 0x3a4   : > { %2626 = vpow2.f32 %v1110_v5 }
 0x3a5   : > { %2628 = vpow2.f32 %v1086_v6 }
 0x3a7   : > { %v2613_v7 = vpop.eup %2612 }
 0x3a8   : > { %v2615_v8 = vpop.eup %2614  ;;  %1158 = vperm.xlu1 %2571, %v2613_v7   ;;  %v1117_v14 = vsel %vm1068_vm2, %v2613_v7, 0.0 }
 0x3a9   : > { %v2617_v9 = vpop.eup %2616  ;;  %1148 = vperm.xlu0 %2570, %v2615_v8   ;;  %v1114_v10 = vsel %vm1068_vm2, %v2615_v8, 0.0 }
 0x3aa   : > { %v1115_v11 = vsel %vm1068_vm2, %v2617_v9, 0.0  ;;  %v2619_v12 = vpop.eup %2618 }
 0x3ab   : > { %v1116_v13 = vadd.f32 %v1115_v11, %v1114_v10  ;;  %v2621_v15 = vpop.eup %2620  ;;  %v1119_v17 = vsel %vm1068_vm2, %v2619_v12, 0.0  ;;  %v2631_v10 = vld [vmem:[#allocation14 + $0x4] ss:$12 sps:$4 sm:$0xff] (!%p2190_p9)   ;;  %v2633_v11 = vld [vmem:[#allocation14] ss:$12 sps:$4 sm:$0xff] (!%p2190_p9)  }
 0x3ac   : > { %1163 = vperm.xlu1 %2571, %v2619_v12   ;;  %v2623_v18 = vpop.eup %2622  ;;  %v1121_v20 = vsel %vm1068_vm2, %v2621_v15, 0.0  ;;  %v2634_v12 = vld [vmem:[#allocation14 + $0x8] ss:$12 sps:$4 sm:$0xff] (!%p2190_p9)   ;;  %1411 = vmatprep.subr.bf16.mxu0 (!%p2190_p9), %v2631_v10 }
 0x3ad   : > { %v1118_v16 = vadd.f32 %v1117_v14, %v1116_v13  ;;  %1153 = vperm.xlu0 %2570, %v2617_v9   ;;  %v2625_v21 = vpop.eup %2624  ;;  %v1123_v24 = vsel %vm1068_vm2, %v2623_v18, 0.0  ;;  %v3005_v9 = vmov (!%p2190_p9), 0   ;;  %v2635_v13 = vld [vmem:[#allocation14 + $0x1c] ss:$12 sps:$4 sm:$0xff] (!%p2190_p9)   ;;  %v2637_v14 = vld [vmem:[#allocation14 + $0x18] ss:$12 sps:$4 sm:$0xff] (!%p2190_p9)   ;;  %1412 = vmatpush1.bf16.msra.mxu0 (!%p2190_p9), %v2633_v11 }
 0x3ae   : > { %v2627_v25 = vpop.eup %2626  ;;  %v1125_v29 = vsel %vm1068_vm2, %v2625_v21, 0.0  ;;  %1443 = vmatprep.mubr.bf16.mxu0 (!%p2190_p9), %v3005_v9  ;;  %2409 = vmatpush3.bf16.msra.mxu1 (!%p2190_p9), %v2634_v12  ;;  %v2703_v10 = vld [vmem:[#allocation15 + $0x34] ss:$12 sps:$4 sm:$0xff] (!%p2190_p9)   ;;  %v2701_v11 = vld [vmem:[#allocation15 + $0x30] ss:$12 sps:$4 sm:$0xff] (!%p2190_p9)  }
 0x3af   : > { %v1120_v19 = vadd.f32 %v1119_v17, %v1118_v16  ;;  %v2629_v27 = vpop.eup %2628  ;;  %v1127_v34 = vsel %vm1068_vm2, %v2627_v25, 0.0  ;;  %1413 = vmatprep.subr.bf16.mxu0 (!%p2190_p9), %v2635_v13  ;;  %2410 = vmatprep.subr.bf16.mxu1 (!%p2190_p9), %v3006_v32  ;;  %v2639_v16 = vld [vmem:[#allocation14 + $0x34] ss:$12 sps:$4 sm:$0xff] (!%p2190_p9)   ;;  %v2641_v17 = vld [vmem:[#allocation14 + $0x30] ss:$12 sps:$4 sm:$0xff] (!%p2190_p9)  }
 0x3b0   : > { %1173 = vperm.xlu1 %2571, %v2623_v18   ;;  %v1113_v35 = vmul.f32 %v2629_v27, %v1112_v28  ;;  %v2642_v18 = vld [vmem:[#allocation14 + $0x38] ss:$12 sps:$4 sm:$0xff] (!%p2190_p9)   ;;  %v2654_v28 = vld [vmem:[#allocation14 + $0x80] ss:$12 sps:$4 sm:$0xff] (!%p2190_p9)  }
 0x3b1   : > { %v1122_v23 = vadd.f32 %v1121_v20, %v1120_v19  ;;  %1168 = vperm.xlu0 %2570, %v2621_v15   ;;  %v2638_v15 = vld [vmem:[#allocation14 + $0x20] ss:$12 sps:$4 sm:$0xff] (!%p2190_p9)   ;;  %1414 = vmatpush1.bf16.msra.mxu0 (!%p2190_p9), %v2637_v14  ;;  %v2645_v20 = vld [vmem:[#allocation14 + $0x48] ss:$12 sps:$4 sm:$0xff] (!%p2190_p9)   ;;  %v2721_v12 = vld [vmem:[#allocation15 + $0x38] ss:$12 sps:$4 sm:$0xff] (!%p2190_p9)  }
 0x3b2   : > { %2411 = vmatpush3.bf16.msra.mxu1 (!%p2190_p9), %v2638_v15  ;;  %1415 = vmatprep.subr.bf16.mxu0 (!%p2190_p9), %v2639_v16  ;;  %v2643_v19 = vld [vmem:[#allocation14 + $0x4c] ss:$12 sps:$4 sm:$0xff] (!%p2190_p9)   ;;  %v2704_v14 = vld [vmem:[#allocation15 + $0x48] ss:$12 sps:$4 sm:$0xff] (!%p2190_p9)   ;;  %v2722_v15 = vld [vmem:[#allocation15 + $0x50] ss:$12 sps:$4 sm:$0xff] (!%p2190_p9)  }
 0x3b3   : > { %v1124_v26 = vadd.f32 %v1123_v24, %v1122_v23  ;;  %2412 = vmatprep.subr.bf16.mxu1 (!%p2190_p9), %v3006_v32  ;;  %v2647_v23 = vld [vmem:[#allocation14 + $0x64] ss:$12 sps:$4 sm:$0xff] (!%p2190_p9)   ;;  %v2649_v24 = vld [vmem:[#allocation14 + $0x60] ss:$12 sps:$4 sm:$0xff] (!%p2190_p9)  }
 0x3b4   : > { %1183 = vperm.xlu1 %2571, %v2627_v25   ;;  %v2650_v25 = vld [vmem:[#allocation14 + $0x68] ss:$12 sps:$4 sm:$0xff] (!%p2190_p9)   ;;  %v2706_v13 = vld [vmem:[#allocation15 + $0x4c] ss:$12 sps:$4 sm:$0xff] (!%p2190_p9)   ;;  %v2709_v16 = vld [vmem:[#allocation15 + $0x64] ss:$12 sps:$4 sm:$0xff] (!%p2190_p9)  }
 0x3b5   : > { %v1126_v33 = vadd.f32 %v1125_v29, %v1124_v26  ;;  %1178 = vperm.xlu0 %2570, %v2625_v21   ;;  %1416 = vmatpush1.bf16.msra.mxu0 (!%p2190_p9), %v2641_v17  ;;  %v2646_v21 = vld [vmem:[#allocation14 + $0x50] ss:$12 sps:$4 sm:$0xff] (!%p2190_p9)   ;;  %v2655_v29 = vld [vmem:[#allocation14 + $0x94] ss:$12 sps:$4 sm:$0xff] (!%p2190_p9)  }
 0x3b6   : > { %2413 = vmatpush3.bf16.msra.mxu1 (!%p2190_p9), %v2642_v18  ;;  %1417 = vmatprep.subr.bf16.mxu0 (!%p2190_p9), %v2643_v19  ;;  %v2651_v26 = vld [vmem:[#allocation14 + $0x7c] ss:$12 sps:$4 sm:$0xff] (!%p2190_p9)   ;;  %v2710_v19 = vld [vmem:[#allocation15 + $0x78] ss:$12 sps:$4 sm:$0xff] (!%p2190_p9)  }
 0x3b7   : > { %v1128_v36 = vadd.f32 %v1127_v34, %v1126_v33  ;;  %2414 = vmatprep.subr.bf16.mxu1 (!%p2190_p9), %v3006_v32  ;;  %v2657_v33 = vld [vmem:[#allocation14 + $0x90] ss:$12 sps:$4 sm:$0xff] (!%p2190_p9)   ;;  %v2658_v34 = vld [vmem:[#allocation14 + $0x98] ss:$12 sps:$4 sm:$0xff] (!%p2190_p9)   ;;  %v2723_v17 = vld [vmem:[#allocation15 + $0x68] ss:$12 sps:$4 sm:$0xff] (!%p2190_p9)  }
 0x3b8   : > { %v2712_v18 = vld [vmem:[#allocation15 + $0x7c] ss:$12 sps:$4 sm:$0xff] (!%p2190_p9)  }
 0x3b9   : > { %v1129_v37 = vadd.f32 %v1128_v36, %v1113_v35  ;;  %1134 = vperm.xlu0 %2570, %v2629_v27   ;;  %1418 = vmatpush1.bf16.msra.mxu0 (!%p2190_p9), %v2645_v20  ;;  %v2653_v27 = vld [vmem:[#allocation14 + $0x78] ss:$12 sps:$4 sm:$0xff] (!%p2190_p9)   ;;  %v2661_v36 = vld [vmem:[#allocation14 + $0xa8] ss:$12 sps:$4 sm:$0xff] (!%p2190_p9)   ;;  %v2724_v20 = vld [vmem:[#allocation15 + $0x80] ss:$12 sps:$4 sm:$0xff] (!%p2190_p9)  }
 0x3ba   : > { %2415 = vmatpush3.bf16.msra.mxu1 (!%p2190_p9), %v2646_v21  ;;  %1419 = vmatprep.subr.bf16.mxu0 (!%p2190_p9), %v2647_v23  ;;  %v2659_v35 = vld [vmem:[#allocation14 + $0xac] ss:$12 sps:$4 sm:$0xff] (!%p2190_p9)   ;;  %v2715_v21 = vld [vmem:[#allocation15 + $0x94] ss:$12 sps:$4 sm:$0xff] (!%p2190_p9)   ;;  %v2713_v23 = vld [vmem:[#allocation15 + $0x90] ss:$12 sps:$4 sm:$0xff] (!%p2190_p9)  }
 0x3bb   : > { %1130 = vst.msk [vmem:[#allocation4] sm:$0xff] %vm1068_vm2, %v1129_v37  ;;  %2416 = vmatprep.subr.bf16.mxu1 (!%p2190_p9), %v3006_v32  ;;  %v2662_v37 = vld [vmem:[#allocation14 + $0xb0] ss:$12 sps:$4 sm:$0xff] (!%p2190_p9)  }
 0x3bd   : > { %2630 = vset.pattern.permute.xlu0 (!%p2190_p9), %v3005_v9  ;;  %1420 = vmatpush1.bf16.msra.mxu0 (!%p2190_p9), %v2649_v24  ;;  %v2725_v24 = vld [vmem:[#allocation15 + $0x98] ss:$12 sps:$4 sm:$0xff] (!%p2190_p9)  }
 0x3be   : > { %2417 = vmatpush3.bf16.msra.mxu1 (!%p2190_p9), %v2650_v25  ;;  %1421 = vmatprep.subr.bf16.mxu0 (!%p2190_p9), %v2651_v26  ;;  %v2719_v25 = vld [vmem:[#allocation15 + $0xac] ss:$12 sps:$4 sm:$0xff] (!%p2190_p9)   ;;  %v2717_v26 = vld [vmem:[#allocation15 + $0xa8] ss:$12 sps:$4 sm:$0xff] (!%p2190_p9)  }
 0x3bf   : > { %2418 = vmatprep.subr.bf16.mxu1 (!%p2190_p9), %v3006_v32 }
 0x3c1   : > { %1422 = vmatpush1.bf16.msra.mxu0 (!%p2190_p9), %v2653_v27  ;;  %v2726_v27 = vld [vmem:[#allocation15 + $0xb0] ss:$12 sps:$4 sm:$0xff] (!%p2190_p9)  }
 0x3c2   : > { %v1209_v31 = vld [vmem:[#allocation4] sm:$0xff] (!%p2190_p9)  ;;  %2419 = vmatpush3.bf16.msra.mxu1 (!%p2190_p9), %v2654_v28  ;;  %1423 = vmatprep.subr.bf16.mxu0 (!%p2190_p9), %v2655_v29 }
 0x3c3   : > { %1212 = vperm.xlu0 (!%p2190_p9), %2630, %v1209_v31   ;;  %2420 = vmatprep.subr.bf16.mxu1 (!%p2190_p9), %v3006_v32  ;;  %v2720_v31 = vld [vmem:[#allocation15 + $0x20] ss:$12 sps:$4 sm:$0xff] (!%p2190_p9)  }
 0x3c5   : > { %1424 = vmatpush1.bf16.msra.mxu0 (!%p2190_p9), %v2657_v33 }
 0x3c6   : > { %2421 = vmatpush3.bf16.msra.mxu1 (!%p2190_p9), %v2658_v34  ;;  %1425 = vmatprep.subr.bf16.mxu0 (!%p2190_p9), %v2659_v35 }
 0x3c7   : > { %2422 = vmatprep.subr.bf16.mxu1 (!%p2190_p9), %v3006_v32 }
 0x3c9   : > { %1426 = vmatpush1.bf16.msra.mxu0 (!%p2190_p9), %v2661_v36 }
 0x3ca   : > { %2423 = vmatpush3.bf16.msra.mxu1 (!%p2190_p9), %v2662_v37 }
 0x3cb   : > { %2428 = vmatprep.subr.bf16.mxu1 (!%p2190_p9), %v3006_v32 }
 0x427   : > { %v1159_v38 = vpop.permute.xlu1 %1158 }
 0x428   : > { %v1149_v39 = vpop.permute.xlu0 %1148  ;;  %v1188_v48 = vmul.f32 %v1159_v38, %v1140_v42  ;;  %v2665_v38 = vld [vmem:[#allocation12 + $0x4] ss:$12 sps:$4 sm:$0xff] (!%p2190_p9)  }
 0x429   : > { %v1186_v45 = vmul.f32 %v1149_v39, %v1138_v40  ;;  %1620 = vmatprep.subr.bf16.mxu0 (!%p2190_p9), %v2665_v38  ;;  %v3397_v39 = vld [vmem:[%s3543_s26] sm:$0xf] (!%p2190_p9) }
 0x42a   : > { %1999 = vst [vmem:[#allocation18 + $0x8] sm:$0xf] (!%p2190_p9), %v3397_v39 }
 0x42b   : > { %v1164_v43 = vpop.permute.xlu1 %1163 }
 0x42c   : > { %v1154_v44 = vpop.permute.xlu0 %1153  ;;  %v1189_v53 = vmul.f32 %v1164_v43, %v1141_v46 }
 0x42d   : > { %v1187_v47 = vmul.f32 %v1154_v44, %v1139_v41  ;;  %v2663_v44 = vld [vmem:[#allocation12] ss:$12 sps:$4 sm:$0xff] (!%p2190_p9)  }
 0x42f   : > { %v1194_v49 = vadd.f32 %v1187_v47, %v1186_v45  ;;  %v1174_v51 = vpop.permute.xlu1 %1173  ;;  %v2666_v45 = vld [vmem:[#allocation12 + $0x8] ss:$12 sps:$4 sm:$0xff] (!%p2190_p9)  }
 0x430   : > { %v1169_v52 = vpop.permute.xlu0 %1168  ;;  %v1191_v59 = vmul.f32 %v1174_v51, %v1143_v55  ;;  %v2669_v47 = vld [vmem:[#allocation12 + $0x1c] ss:$12 sps:$4 sm:$0xff] (!%p2190_p9)  }
 0x431   : > { %v1195_v54 = vadd.f32 %v1194_v49, %v1188_v48  ;;  %v1190_v22 = vmul.f32 %v1169_v52, %v1142_v50  ;;  %v2667_v48 = vld [vmem:[#allocation12 + $0x18] ss:$12 sps:$4 sm:$0xff] (!%p2190_p9)   ;;  %v2670_v49 = vld [vmem:[#allocation12 + $0x20] ss:$12 sps:$4 sm:$0xff] (!%p2190_p9)   ;;  %v2671_v51 = vld [vmem:[#allocation12 + $0x30] ss:$12 sps:$4 sm:$0xff] (!%p2190_p9)  }
 0x432   : > { %v2673_v50 = vld [vmem:[#allocation12 + $0x34] ss:$12 sps:$4 sm:$0xff] (!%p2190_p9)   ;;  %v2674_v52 = vld [vmem:[#allocation12 + $0x38] ss:$12 sps:$4 sm:$0xff] (!%p2190_p9)   ;;  %v2678_v55 = vld [vmem:[#allocation12 + $0x50] ss:$12 sps:$4 sm:$0xff] (!%p2190_p9)  }
 0x433   : > { %v1196_v56 = vadd.f32 %v1195_v54, %v1189_v53  ;;  %v1184_v61 = vpop.permute.xlu1 %1183  ;;  %v2677_v53 = vld [vmem:[#allocation12 + $0x4c] ss:$12 sps:$4 sm:$0xff] (!%p2190_p9)   ;;  %v2675_v54 = vld [vmem:[#allocation12 + $0x48] ss:$12 sps:$4 sm:$0xff] (!%p2190_p9)  }
 0x434   : > { %v1179_v58 = vpop.permute.xlu0 %1178  ;;  %v1193_v4 = vmul.f32 %v1184_v61, %v1145_v30  ;;  %v2689_v30 = vld [vmem:[#allocation12 + $0x94] ss:$12 sps:$4 sm:$0xff] (!%p2190_p9)   ;;  %v2687_v61 = vld [vmem:[#allocation12 + $0x90] ss:$12 sps:$4 sm:$0xff] (!%p2190_p9)  }
 0x435   : > { %v1197_v60 = vadd.f32 %v1196_v56, %v1190_v22  ;;  %v1192_v63 = vmul.f32 %v1179_v58, %v1144_v57  ;;  %v2681_v56 = vld [vmem:[#allocation12 + $0x64] ss:$12 sps:$4 sm:$0xff] (!%p2190_p9)   ;;  %v2679_v22 = vld [vmem:[#allocation12 + $0x60] ss:$12 sps:$4 sm:$0xff] (!%p2190_p9)   ;;  %v2682_v57 = vld [vmem:[#allocation12 + $0x68] ss:$12 sps:$4 sm:$0xff] (!%p2190_p9)  }
 0x436   : > { %v2685_v58 = vld [vmem:[#allocation12 + $0x7c] ss:$12 sps:$4 sm:$0xff] (!%p2190_p9)  }
 0x437   : > { %v1198_v62 = vadd.f32 %v1197_v60, %v1191_v59  ;;  %v2683_v59 = vld [vmem:[#allocation12 + $0x78] ss:$12 sps:$4 sm:$0xff] (!%p2190_p9)   ;;  %v2686_v60 = vld [vmem:[#allocation12 + $0x80] ss:$12 sps:$4 sm:$0xff] (!%p2190_p9)  }
 0x438   : > { %v1135_v3 = vpop.permute.xlu0 %1134 }
 0x439   : > { %v1199_v5 = vadd.f32 %v1198_v62, %v1192_v63  ;;  %v1137_v7 = vmul.f32 %v1135_v3, %v1131_v2  ;;  %1207 = sbr.rel (%p2190_p9) target bundleno = 1434 (0x59a), region = 112  ;;  %v2690_v62 = vld [vmem:[#allocation12 + $0x98] ss:$12 sps:$4 sm:$0xff] (!%p2190_p9)   ;;  %v2691_v2 = vld [vmem:[#allocation12 + $0xa8] ss:$12 sps:$4 sm:$0xff] (!%p2190_p9)  }
 0x43a   : > { %v2693_v63 = vld [vmem:[#allocation12 + $0xac] ss:$12 sps:$4 sm:$0xff] (!%p2190_p9)   ;;  %v2694_v3 = vld [vmem:[#allocation12 + $0xb0] ss:$12 sps:$4 sm:$0xff] (!%p2190_p9)  }
 0x43b   : > { %v1200_v6 = vadd.f32 %v1199_v5, %v1193_v4  ;;  %v2697_v4 = vld [vmem:[#allocation15 + $0x4] ss:$12 sps:$4 sm:$0xff] (!%p2190_p9)   ;;  %v2695_v5 = vld [vmem:[#allocation15] ss:$12 sps:$4 sm:$0xff] (!%p2190_p9)  }
 0x43d   : > { %v1201_v8 = vadd.f32 %v1200_v6, %v1137_v7  ;;  %v2716_v6 = vld [vmem:[#allocation15 + $0x8] ss:$12 sps:$4 sm:$0xff] (!%p2190_p9)  }
 0x43e   : > { %v2700_v7 = vld [vmem:[#allocation15 + $0x1c] ss:$12 sps:$4 sm:$0xff] (!%p2190_p9)  }
 0x43f   : > { %1202 = vst [vmem:[#allocation5] sm:$0xff] %v1201_v8  ;;  %v2698_v8 = vld [vmem:[#allocation15 + $0x18] ss:$12 sps:$4 sm:$0xff] (!%p2190_p9)  }
 0x442   : > { %v1213_v40 = vpop.permute.xlu0 %1212 }
 0x443   : > { %2727 = vrcp.f32 %v1213_v40 }
 0x446   : > { %v1208_v41 = vld [vmem:[#allocation5] sm:$0xff] }
 0x44d   : > { %v2728_v42 = vpop.eup %2727 }
 0x44e   : > { %v3400_v43 = vmul.f32 %v2728_v42, %v1208_v41 }
 0x450   : > { %v1217_v46 = vpack.c.bf16 %v3400_v43, %v3400_v43 }
 0x452   : > { %1444 = vmatmul.mubr.bf16.vlgmr.msra.gmra.mrb[0].mxu0 %v1217_v46  ;;  %2425 = vmatmul.mubr.bf16.vlgmr.msra.gmra.mrb[0].mxu1 %v1217_v46 }
 0x453   : > { %1621 = vmatpush1.bf16.msra.mxu0 %v2663_v44  ;;  %2429 = vmatpush3.bf16.msra.mxu1 %v2666_v45 }
 0x454   : > { %1622 = vmatprep.subr.bf16.mxu0 %v2669_v47  ;;  %2430 = vmatprep.subr.bf16.mxu1 %v3006_v32 }
 0x455   : > { %1652 = vmatprep.mubr.bf16.mxu0 %v3005_v9  ;;  %2444 = vmatprep.mubr.msk.bf16.mxu1 %vm3007_vm3, %v3006_v32 }
 0x457   : > { %1623 = vmatpush1.bf16.msra.mxu0 %v2667_v48  ;;  %2431 = vmatpush3.bf16.msra.mxu1 %v2670_v49 }
 0x458   : > { %1624 = vmatprep.subr.bf16.mxu0 %v2673_v50  ;;  %2432 = vmatprep.subr.bf16.mxu1 %v3006_v32  ;;  %v2263_v50 = vld [vmem:[%s3502_s11] ss:$0 sm:$0xff] }
 0x45b   : > { %1625 = vmatpush1.bf16.msra.mxu0 %v2671_v51  ;;  %2433 = vmatpush3.bf16.msra.mxu1 %v2674_v52 }
 0x45c   : > { %1626 = vmatprep.subr.bf16.mxu0 %v2677_v53  ;;  %2434 = vmatprep.subr.bf16.mxu1 %v3006_v32 }
 0x45f   : > { %1627 = vmatpush1.bf16.msra.mxu0 %v2675_v54  ;;  %2435 = vmatpush3.bf16.msra.mxu1 %v2678_v55 }
 0x460   : > { %1628 = vmatprep.subr.bf16.mxu0 %v2681_v56  ;;  %2436 = vmatprep.subr.bf16.mxu1 %v3006_v32 }
 0x463   : > { %1629 = vmatpush1.bf16.msra.mxu0 %v2679_v22  ;;  %2437 = vmatpush3.bf16.msra.mxu1 %v2682_v57 }
 0x464   : > { %1630 = vmatprep.subr.bf16.mxu0 %v2685_v58  ;;  %2438 = vmatprep.subr.bf16.mxu1 %v3006_v32  ;;  %v2265_v58 = vld [vmem:[%s3503_s12] ss:$0 sm:$0xff] }
 0x467   : > { %1631 = vmatpush1.bf16.msra.mxu0 %v2683_v59  ;;  %2439 = vmatpush3.bf16.msra.mxu1 %v2686_v60 }
 0x468   : > { %1632 = vmatprep.subr.bf16.mxu0 %v2689_v30  ;;  %2440 = vmatprep.subr.bf16.mxu1 %v3006_v32 }
 0x46b   : > { %1633 = vmatpush1.bf16.msra.mxu0 %v2687_v61  ;;  %2441 = vmatpush3.bf16.msra.mxu1 %v2690_v62 }
 0x46c   : > { %1634 = vmatprep.subr.bf16.mxu0 %v2693_v63  ;;  %2442 = vmatprep.subr.bf16.mxu1 %v3006_v32 }
 0x46f   : > { %1635 = vmatpush1.bf16.msra.mxu0 %v2691_v2  ;;  %2443 = vmatpush3.bf16.msra.mxu1 %v2694_v3 }
 0x470   : > { %1861 = vmatprep.subr.bf16.mxu0 %v2697_v4  ;;  %2448 = vmatprep.subr.bf16.mxu1 %v3006_v32  ;;  %v2268_v4 = vld [vmem:[%s3505_s14] ss:$0 sm:$0xff] }
 0x472   : > { %1653 = vmatmul.mubr.bf16.vlgmr.msra.gmra.mrb[4].mxu0 %v3397_v39  ;;  %2445 = vmatmul.mubr.bf16.vlgmr.msra.gmra.mrb[4].mxu1 %v3397_v39 }
 0x473   : > { %1862 = vmatpush1.bf16.msra.mxu0 %v2695_v5  ;;  %2449 = vmatpush3.bf16.msra.mxu1 %v2716_v6 }
 0x474   : > { %1863 = vmatprep.subr.bf16.mxu0 %v2700_v7  ;;  %2450 = vmatprep.subr.bf16.mxu1 %v3006_v32  ;;  %v2267_v7 = vld [vmem:[%s3544_s22] ss:$0 sm:$0xff] }
 0x475   : > { %1893 = vmatprep.mubr.bf16.mxu0 %v3005_v9  ;;  %2464 = vmatprep.mubr.msk.bf16.mxu1 %vm3007_vm3, %v3006_v32  ;;  %v2707_v9 = vld [vmem:[#allocation15 + $0x60] ss:$12 sps:$4 sm:$0xff]  }
 0x477   : > { %1864 = vmatpush1.bf16.msra.mxu0 %v2698_v8  ;;  %2451 = vmatpush3.bf16.msra.mxu1 %v2720_v31 }
 0x478   : > { %1865 = vmatprep.subr.bf16.mxu0 %v2703_v10  ;;  %2452 = vmatprep.subr.bf16.mxu1 %v3006_v32 }
 0x47b   : > { %1866 = vmatpush1.bf16.msra.mxu0 %v2701_v11  ;;  %2453 = vmatpush3.bf16.msra.mxu1 %v2721_v12 }
 0x47c   : > { %1867 = vmatprep.subr.bf16.mxu0 %v2706_v13  ;;  %2454 = vmatprep.subr.bf16.mxu1 %v3006_v32 }
 0x47f   : > { %1868 = vmatpush1.bf16.msra.mxu0 %v2704_v14  ;;  %2455 = vmatpush3.bf16.msra.mxu1 %v2722_v15 }
 0x480   : > { %1869 = vmatprep.subr.bf16.mxu0 %v2709_v16  ;;  %2456 = vmatprep.subr.bf16.mxu1 %v3006_v32 }
 0x483   : > { %1870 = vmatpush1.bf16.msra.mxu0 %v2707_v9  ;;  %2457 = vmatpush3.bf16.msra.mxu1 %v2723_v17 }
 0x484   : > { %1871 = vmatprep.subr.bf16.mxu0 %v2712_v18  ;;  %2458 = vmatprep.subr.bf16.mxu1 %v3006_v32 }
 0x487   : > { %1872 = vmatpush1.bf16.msra.mxu0 %v2710_v19  ;;  %2459 = vmatpush3.bf16.msra.mxu1 %v2724_v20 }
 0x488   : > { %1873 = vmatprep.subr.bf16.mxu0 %v2715_v21  ;;  %2460 = vmatprep.subr.bf16.mxu1 %v3006_v32 }
 0x48b   : > { %1874 = vmatpush1.bf16.msra.mxu0 %v2713_v23  ;;  %2461 = vmatpush3.bf16.msra.mxu1 %v2725_v24 }
 0x48c   : > { %1875 = vmatprep.subr.bf16.mxu0 %v2719_v25  ;;  %2462 = vmatprep.subr.bf16.mxu1 %v3006_v32 }
 0x48f   : > { %1876 = vmatpush1.bf16.msra.mxu0 %v2717_v26  ;;  %2463 = vmatpush3.bf16.msra.mxu1 %v2726_v27 }
 0x492   : > { %1894 = vmatmul.mubr.bf16.vlgmr.msra.gmra.mrb[8].mxu0 %v3298_v1  ;;  %2465 = vmatmul.mubr.bf16.vlgmr.msra.gmra.mrb[8].mxu1 %v3298_v1 }
 0x525   : > { %v1445_v28 = vpop.f32.mrb[0].mxu0  ;;  %v1486_v29 = vpop.f32.mrb[0].mxu1 }
 0x526   : > { %v1447_v33 = vpop.f32.mrb[1].mxu0  ;;  %v2426_v34 = vpop.f32.mrb[1].mxu1 }
 0x527   : > { %v1449_v35 = vpop.f32.mrb[2].mxu0  ;;  %v1489_v36 = vpop.f32.mrb[2].mxu1 }
 0x528   : > { %v1450_v37 = vpop.f32.mrb[3].mxu0  ;;  %v2427_v38 = vpop.f32.mrb[3].mxu1 }
 0x545   : > { %v1654_v39 = vpop.f32.mrb[4].mxu0  ;;  %v1695_v40 = vpop.f32.mrb[4].mxu1 }
 0x546   : > { %v1655_v41 = vadd.f32 %v1654_v39, %v1445_v28  ;;  %v1696_v42 = vadd.f32 %v1695_v40, %v1486_v29  ;;  %v1656_v44 = vpop.f32.mrb[5].mxu0  ;;  %v2446_v32 = vpop.f32.mrb[5].mxu1 }
 0x547   : > { %v1657_v45 = vadd.f32 %v1656_v44, %v1447_v33  ;;  %v1658_v46 = vpop.f32.mrb[6].mxu0  ;;  %v1698_v47 = vpop.f32.mrb[6].mxu1 }
 0x548   : > { %v1659_v48 = vpop.f32.mrb[7].mxu0  ;;  %v2447_v49 = vpop.f32.mrb[7].mxu1  ;;  %v1979_v31 = vadd.f32 %v2267_v7, %v1696_v42 }
 0x565   : > { %v1895_v1 = vpop.f32.mrb[8].mxu0  ;;  %v1936_v51 = vpop.f32.mrb[8].mxu1 }
 0x566   : > { %v1942_v52 = vadd.f32 %v1895_v1, %v1655_v41  ;;  %v1897_v53 = vpop.f32.mrb[9].mxu0  ;;  %v2466_v54 = vpop.f32.mrb[9].mxu1  ;;  %v1987_v6 = vadd.f32 %v2268_v4, %v1936_v51 }
 0x567   : > { %v1957_v55 = vadd.f32 %v1897_v53, %v1657_v45  ;;  %v1899_v56 = vpop.f32.mrb[10].mxu0  ;;  %v1939_v22 = vpop.f32.mrb[10].mxu1 }
 0x568   : > { %v1950_v57 = vadd.f32 %v2263_v50, %v1942_v52  ;;  %v1900_v59 = vpop.f32.mrb[11].mxu0  ;;  %v2467_v60 = vpop.f32.mrb[11].mxu1 }
 0x569   : > { %v1965_v61 = vadd.f32 %v2265_v58, %v1957_v55 }
 0x56a   : > { %v2264_v30 = vmul.f32 -1.442695, %v1950_v57 }
 0x56b   : > { %v2266_v62 = vmul.f32 -1.442695, %v1965_v61 }
 0x56c   : > { %2729 = vpow2.f32 %v2264_v30 }
 0x56d   : > { %2731 = vpow2.f32 %v2266_v62 }
 0x576   : > { %v2730_v63 = vpop.eup %2729 }
 0x577   : > { %v1954_v2 = vadd.f32 1.0, %v2730_v63  ;;  %v2732_v3 = vpop.eup %2731 }
 0x578   : > { %v1969_v5 = vadd.f32 1.0, %v2732_v3 }
 0x579   : > { %2733 = vrcp.f32 %v1954_v2 }
 0x57a   : > { %2735 = vrcp.f32 %v1969_v5 }
 0x583   : > { %v2734_v8 = vpop.eup %2733 }
 0x584   : > { %v1988_v10 = vmul.f32 %v2734_v8, %v1987_v6  ;;  %v2736_v12 = vpop.eup %2735 }
 0x585   : > { %v1991_v13 = vsub.f32 1.0, %v2736_v12  ;;  %v1993_v15 = vmul.f32 %v2736_v12, %v3294_v0 }
 0x586   : > { %v1989_v11 = vadd.f32 %v1988_v10, %v1979_v31 }
 0x588   : > { %2737 = vtanh.f32 %v1989_v11 }
 0x592   : > { %v2738_v14 = vpop.eup %2737 }
 0x593   : > { %v1992_v16 = vmul.f32 %v2738_v14, %v1991_v13 }
 0x595   : > { %v1994_v9 = vadd.f32 %v1993_v15, %v1992_v16 }
 0x597   : > { %1995 = vst [vmem:[#allocation17] sm:$0xff] %v1994_v9  ;;  %v2278_v17 = vpack.c.bf16 %v3400_v43, %v1994_v9 }
 0x599   : > { %2279 = vst [vmem:[#allocation18] sm:$0xff] %v2278_v17  }
 0x59a PF: > { %p2531_p2 = scmp.eq.s32.totalorder %s3101_s24, 1  ;;  %s3008_s19 = smov [#allocation17]  }
 0x59b   : > { %s2007_s16 = sshll.u32 %s3008_s19, 4  ;;  %s3009_s13 = smov [#allocation18]   ;;  %s2008_s16 = int_to_ptr.vmem [resolvable:$true] %s2007_s16 }
 0x59c   : > { %s2018_s27 = sshll.u32 %s3009_s13, 4  ;;  %s2907_s5 = scalar_lea.vmem %s2008_s16, 128  ;;  %s2019_s27 = int_to_ptr.vmem [resolvable:$true] %s2018_s27 }
 0x59d   : > { %p2908_p10 = scmp.ne.s32.totalorder %s2008_s16, %s2907_s5  ;;  %p2914_p12 = scmp.lt.s32.totalorder %s2008_s16, %s2008_s16 }
 0x59e   : > { %p2915_p3 = scmp.lt.s32.totalorder %s2907_s5, %s2907_s5 }
 0x59f   : > { %p2909_p11 = pnand %p2908_p10, %p2531_p2 }
 0x5a0   : > { %p2916_p4 = por %p2915_p3, %p2914_p12 }
 0x5a1   : > { %p2910_p8 = pneg %p2909_p11 }
 0x5a3   : > { %p2917_p13 = pnand %p2916_p4, %p2910_p8 }
 0x5a5   : > { %2920 = shalt.err (!%p2917_p13)
}
 0x5a6   : > { %s3545_s15 = sld [smem:[#allocation30_spill]] }
 0x5ac   : > { %s2921_s26 = scalar_lea.hbm %s3545_s15, 128 }
 0x5ad   : > { %p2922_p6 = scmp.ne.s32.totalorder %s3545_s15, %s2921_s26  ;;  %p2927_p5 = scmp.lt.u32.totalorder %s2921_s26, %s3545_s15 }
 0x5af   : > { %p2923_p0 = pnand %p2922_p6, %p2531_p2 }
 0x5b1   : > { %p2924_p1 = pneg %p2923_p0 }
 0x5b3   : > { %p2929_p7 = pnand %p2927_p5, %p2924_p1 }
 0x5b5   : > { %2932 = shalt.err (!%p2929_p7)
}
 0x5b6   : > { %2493 = dma.vmem_to_hbm [thread:$0]  (%p2531_p2), %s2008_s16, 128, %s3545_s15, [#allocation8]  }
 0x5b7   : > { %s2933_s25 = scalar_lea.vmem %s2019_s27, 192  ;;  %p2940_p8 = scmp.lt.s32.totalorder %s2019_s27, %s2019_s27 }
 0x5b8   : > { %p2934_p9 = scmp.ne.s32.totalorder %s2019_s27, %s2933_s25  ;;  %p2941_p12 = scmp.lt.s32.totalorder %s2933_s25, %s2933_s25 }
 0x5ba   : > { %p2935_p10 = pnand %p2934_p9, %p2531_p2  ;;  %p2942_p3 = por %p2941_p12, %p2940_p8 }
 0x5bc   : > { %p2936_p11 = pneg %p2935_p10 }
 0x5be   : > { %p2943_p4 = pnand %p2942_p3, %p2936_p11 }
 0x5c0   : > { %2946 = shalt.err (!%p2943_p4)
}
 0x5c1   : > { %s3546_s19 = sld [smem:[#allocation31_spill]] }
 0x5c7   : > { %s2947_s13 = scalar_lea.hbm %s3546_s19, 192 }
 0x5c8   : > { %p2948_p13 = scmp.ne.s32.totalorder %s3546_s19, %s2947_s13  ;;  %p2953_p1 = scmp.lt.u32.totalorder %s2947_s13, %s3546_s19 }
 0x5ca   : > { %p2949_p6 = pnand %p2948_p13, %p2531_p2 }
 0x5cc   : > { %p2950_p0 = pneg %p2949_p6 }
 0x5ce   : > { %p2955_p5 = pnand %p2953_p1, %p2950_p0 }
 0x5d0   : > { %2958 = shalt.err (!%p2955_p5)
}
 0x5d1   : > { %2495 = dma.vmem_to_hbm [thread:$0]  (%p2531_p2), %s2019_s27, 192, %s3546_s19, [#allocation19]  }
 0x5d2   : > { %2980 = dma.done.wait (%p2531_p2), [#allocation8], 128  }
 0x5d3   : > { %2982 = vsyncadd (%p2531_p2), [#allocation8], 4294967168 }
 0x5d4   : > { %2984 = dma.done.wait (%p2531_p2), [#allocation19], 192  }
 0x5d5   : > { %2986 = vsyncadd (%p2531_p2), [#allocation19], 4294967104 }
 0x5d6 PF: > { %s3547_s0 = sld [smem:[#allocation26_spill]] }
 0x5dc   : > { %s33_s21 = sadd.s32 1, %s3547_s0  }
 0x5dd   : > { %p30_p7 = scmp.ge.s32.totalorder %s33_s21, 4  }
 0x5df   :  { %32 = sbr.rel (!%p30_p7) target bundleno = 12 (0xc), region = 151 }
 0x5e6   :  { %2035 = vsyncpa [#allocation7], 1 }
 0x5e7   :  { %2037 = vsyncpa [#allocation7 + $0x1], 1 }
 0x5e8   :  { %2038 = vsyncpa [#allocation10], 1 }
 0x5e9   :  { %2039 = vsyncpa [#allocation13], 1 }
 0x5ea   :  { %2040 = vsyncpa [#allocation16], 1 }
 0x5eb   :  { %2041 = vsyncpa [#allocation8], 1 }
 0x5ec   :  { %2043 = vsyncpa [#allocation8 + $0x1], 1 }
 0x5ed   :  { %2044 = vsyncpa [#allocation19], 1 }

</bundles_post_ra>
